<compile_context>
chip_gen: v5e
topology: v5e:2x2
jax: 0.10.0
libtpu: 0.0.40
codegen_flags: <defaults>
</compile_context>

<pallas_src>
import math

import jax
import jax.numpy as jnp
from jax.experimental import pallas as pl
from jax.experimental.pallas import tpu as pltpu

LANE = 128   # lane padding: channels / features / patch-lanes ride full 128-lane vregs
SUB = 8      # sublane granularity


def _ru(x, m):
    return ((x + m - 1) // m) * m


# ---------------------------------------------------------------------------
# Fused per-sample kernel
# ---------------------------------------------------------------------------
def _make_detector_kernel(cfgs, n_dense):
    L = len(cfgs)
    P = cfgs[-1]["Hp"] * cfgs[-1]["Wp"]

    def kernel(*refs):
        it = iter(refs)
        pat_ref = next(it)                                     # (1, RY0, LANE) bf16
        w0_ref, b0_ref = next(it), next(it)
        conv_refs = [(next(it), next(it)) for _ in range(L - 1)]
        dense_refs = [(next(it), next(it)) for _ in range(n_dense)]
        o_ref = next(it)
        y_refs = [next(it) for _ in range(L)]
        x_refs = [next(it) for _ in range(L - 1)]

        f32, bf16 = jnp.float32, jnp.bfloat16

        # ---- conv layer 0: lane-packed im2col -> ONE MXU matmul + bias + ReLU ----
        y_refs[0][...] = jnp.maximum(
            jnp.dot(pat_ref[0], w0_ref[...], preferred_element_type=f32)
            + b0_ref[...], 0.0)

        # ---- later conv layers: fused MaxPool2d(2) gather + K*K tap matmuls ------
        for l in range(1, L):
            prev, cfg = cfgs[l - 1], cfgs[l]
            y_prev, x_ref = y_refs[l - 1], x_refs[l - 1]
            Wy, Hp, Wp = prev["Wy"], prev["Hp"], prev["Wp"]
            x_ref[...] = jnp.zeros(x_ref.shape, f32)
            for hp in range(Hp):
                base = 2 * hp * Wy
                tl = y_prev[pl.ds(base, Wp, stride=2), :]
                tr = y_prev[pl.ds(base + 1, Wp, stride=2), :]
                bl = y_prev[pl.ds(base + Wy, Wp, stride=2), :]
                br = y_prev[pl.ds(base + Wy + 1, Wp, stride=2), :]
                x_ref[pl.ds(hp * Wp, Wp), :] = jnp.maximum(jnp.maximum(tl, tr),
                                                           jnp.maximum(bl, br))
            # conv: k*k row-shifted matmuls (bf16 operands, f32 accumulation).
            w_ref, b_ref = conv_refs[l - 1]
            RY = cfg["RY"]
            acc = None
            for t, sft in enumerate(cfg["shifts"]):
                part = jnp.dot(x_ref[pl.ds(sft, RY), :].astype(bf16), w_ref[t],
                               preferred_element_type=f32)
                acc = part if acc is None else acc + part
            y_refs[l][...] = jnp.maximum(acc + b_ref[...], 0.0)

        # ---- final MaxPool2d(2): pooled pixels packed into LANE blocks (dense LHS) ---
        last = cfgs[-1]
        y_last = y_refs[-1]
        Wy, Hp, Wp = last["Wy"], last["Hp"], last["Wp"]
        pieces = []
        for hp in range(Hp):
            base = 2 * hp * Wy
            tl = y_last[pl.ds(base, Wp, stride=2), :]
            tr = y_last[pl.ds(base + 1, Wp, stride=2), :]
            bl = y_last[pl.ds(base + Wy, Wp, stride=2), :]
            br = y_last[pl.ds(base + Wy + 1, Wp, stride=2), :]
            m = jnp.maximum(jnp.maximum(tl, tr), jnp.maximum(bl, br))   # (Wp, LANE)
            for wp in range(Wp):
                pieces.append(m[wp:wp + 1, :])
        lhs = jnp.concatenate(pieces, axis=1)                  # (1, P*LANE)
        lhs = jnp.broadcast_to(lhs, (SUB, P * LANE))           # pad M to one sublane tile

        # ---- dense head: torch flatten folded into ONE K = P*LANE matmul -------------
        wd_ref, bd_ref = dense_refs[0]
        feat = jnp.dot(lhs.astype(bf16), wd_ref[...],
                       preferred_element_type=f32) + bd_ref[...]
        for d in range(1, n_dense):
            feat = jnp.maximum(feat, 0.0)        # ReLU of the previous hidden layer
            # TODO(synk): nn.Dropout is identity at inference; training-mode dropout
            # RNG is not implemented.
            wd_ref, bd_ref = dense_refs[d]
            feat = jnp.dot(feat.astype(bf16), wd_ref[...],
                           preferred_element_type=f32) + bd_ref[...]
        o_ref[0] = feat

    return kernel


# ---------------------------------------------------------------------------
# Wrapper: pack parameters ONCE, return a jitted forward(x_nchw)
# ---------------------------------------------------------------------------
def make_detector_forward(conv_params, dense_params, input_shape):
    """SimpleDetector forward (gap=False branch, inference) as one fused kernel.

    conv_params:  list of (w_hwio (k,k,Cin,Cout), b (Cout,))
    dense_params: list of (w (in,out), b (out,)); the first Linear consumes the
                  torch NCHW-flatten of the conv stack's output.
    input_shape:  (N, C, H, W) of the inputs this forward will be called with.
    """
    # TODO(synk): gap=True (AdaptiveAvgPool1d head) is not implemented.
    N, C0, H0, W0 = input_shape
    L = len(conv_params)
    f32, bf16 = jnp.float32, jnp.bfloat16

    # ---- static geometry per conv stage ------------------------------------
    cfgs = []
    H, W, C = H0, W0, C0
    for l, (w, b) in enumerate(conv_params):
        k, cout = w.shape[0], w.shape[3]
        assert w.shape[1] == k and w.shape[2] == C and cout <= LANE
        Ho, Wo = H - k + 1, W - k + 1
        Hp, Wp = Ho // 2, Wo // 2
        if l == 0:
            assert k * k * C <= LANE, "first conv patch does not fit in 128 lanes"
            cfg = dict(k=k, Cin=C, Cout=cout, Wy=Wo, Hp=Hp, Wp=Wp,
                       RY=_ru(Ho * Wo, SUB))
        else:
            Wy = W                                    # y_l rows are indexed in x_l coords
            max_pool_row = (2 * (Hp - 1) + 1) * Wy + 2 * (Wp - 1) + 1
            RY = _ru(max_pool_row + 1, SUB)           # only rows the pooling will keep
            max_shift = (k - 1) * W + (k - 1)
            RX = max(_ru(H * W, SUB), _ru(RY + max_shift, SUB))
            cfg = dict(k=k, Cin=C, Cout=cout, Wy=Wy, Hp=Hp, Wp=Wp, RY=RY, RX=RX,
                       shifts=[di * W + dj for di in range(k) for dj in range(k)])
        cfgs.append(cfg)
        H, W, C = Hp, Wp, cout
    Hp_f, Wp_f, C_f = H, W, C
    P = Hp_f * Wp_f

    # ---- pack parameters once: bf16 matmul operands, f32 biases -------------
    weights = []
    w0, b0 = conv_params[0]
    c0 = cfgs[0]
    kk_cin0 = c0["k"] * c0["k"] * c0["Cin"]
    w0p = jnp.zeros((LANE, LANE), f32).at[:kk_cin0, :c0["Cout"]].set(
        w0.astype(f32).reshape(kk_cin0, c0["Cout"]))
    weights.append(w0p.astype(bf16))
    weights.append(jnp.zeros((1, LANE), f32).at[0, :c0["Cout"]].set(b0.astype(f32)))
    for l in range(1, L):
        w, b = conv_params[l]
        cfg = cfgs[l]
        k, cin, cout = cfg["k"], cfg["Cin"], cfg["Cout"]
        wt = jnp.zeros((k * k, LANE, LANE), f32).at[:, :cin, :cout].set(
            w.astype(f32).reshape(k * k, cin, cout))
        weights.append(wt.astype(bf16))
        weights.append(jnp.zeros((1, LANE), f32).at[0, :cout].set(b.astype(f32)))

    # First Linear: fold torch's NCHW flatten (index = c*P + p) into the weight by
    # permuting its rows into per-spatial-position LANE blocks (row p*LANE + c).
    wd0, bd0 = dense_params[0]
    din, n0 = wd0.shape
    assert din == C_f * P, (din, C_f, P)
    F0p = _ru(n0, LANE)
    blk = wd0.astype(f32).reshape(C_f, P, n0).transpose(1, 0, 2)        # (P, C_f, n0)
    wd0f = jnp.zeros((P, LANE, F0p), f32).at[:, :C_f, :n0].set(blk)
    weights.append(wd0f.reshape(P * LANE, F0p).astype(bf16))
    weights.append(jnp.zeros((1, F0p), f32).at[0, :n0].set(bd0.astype(f32)))
    prev_p = F0p
    for (wd, bd) in dense_params[1:]:
        fi, fo = wd.shape
        fo_p = _ru(fo, LANE)
        wpad = jnp.zeros((prev_p, fo_p), f32).at[:fi, :fo].set(wd.astype(f32))
        weights.append(wpad.astype(bf16))
        weights.append(jnp.zeros((1, fo_p), f32).at[0, :fo].set(bd.astype(f32)))
        prev_p = fo_p
    n_dense = len(dense_params)
    classes = dense_params[-1][0].shape[1]
    F_last_p = prev_p

    # ---- specs / scratch (all static) ----------------------------------------
    def _const_spec(a):
        nd = a.ndim
        return pl.BlockSpec(a.shape, lambda n, _nd=nd: (0,) * _nd)

    RY0 = cfgs[0]["RY"]
    in_specs = [pl.BlockSpec((1, RY0, LANE), lambda n: (n, 0, 0))]
    in_specs += [_const_spec(a) for a in weights]
    out_specs = pl.BlockSpec((1, SUB, F_last_p), lambda n: (n, 0, 0))
    scratch = [pltpu.VMEM((cfg["RY"], LANE), f32) for cfg in cfgs]          # conv+ReLU slabs
    scratch += [pltpu.VMEM((cfgs[l]["RX"], LANE), f32) for l in range(1, L)]  # pooled inputs

    call = pl.pallas_call(
        _make_detector_kernel(cfgs, n_dense),
        grid=(N,),
        out_shape=jax.ShapeDtypeStruct((N, SUB, F_last_p), f32),
        in_specs=in_specs,
        out_specs=out_specs,
        scratch_shapes=scratch,
        compiler_params=pltpu.CompilerParams(
            dimension_semantics=("parallel",)),   # v7x: 2nd TensorCore takes half the batch
    )

    k0, cin0 = cfgs[0]["k"], cfgs[0]["Cin"]
    Ho0, Wo0 = H0 - k0 + 1, W0 - k0 + 1

    def fwd(x_nchw):
        x = jnp.transpose(x_nchw, (0, 2, 3, 1)).astype(f32)       # NCHW -> NHWC
        # lane-packed im2col for the first conv: lane = (di*k + dj)*Cin + c
        cols = [x[:, di:di + Ho0, dj:dj + Wo0, :]
                for di in range(k0) for dj in range(k0)]
        patches = jnp.concatenate(cols, axis=-1).reshape(N, Ho0 * Wo0, k0 * k0 * cin0)
        pat = jnp.zeros((N, RY0, LANE), bf16).at[
            :, :Ho0 * Wo0, :k0 * k0 * cin0].set(patches.astype(bf16))
        out = call(pat, *weights)
        return out[:, 0, :classes]

    return jax.jit(fwd)


# ---------------------------------------------------------------------------
# Pure-JAX reference (XLA convs, f32 HIGHEST) for numerical verification
# ---------------------------------------------------------------------------
def _reference_forward(x_nchw, conv_params, dense_params):
    hi = jax.lax.Precision.HIGHEST
    x = x_nchw.astype(jnp.float32)
    for (w, b) in conv_params:                      # w: HWIO
        x = jax.lax.conv_general_dilated(
            x, w.astype(jnp.float32), window_strides=(1, 1), padding="VALID",
            dimension_numbers=("NCHW", "HWIO", "NCHW"), precision=hi)
        x = jnp.maximum(x + b.reshape(1, -1, 1, 1), 0.0)
        x = jax.lax.reduce_window(x, -jnp.inf, jax.lax.max,
                                  (1, 1, 2, 2), (1, 1, 2, 2), "VALID")
    feat = x.reshape(x.shape[0], -1)                # torch NCHW flatten
    for (w, b) in dense_params[:-1]:
        feat = jnp.maximum(jnp.dot(feat, w, precision=hi) + b, 0.0)
    w, b = dense_params[-1]
    return jnp.dot(feat, w, precision=hi) + b


# ---------------------------------------------------------------------------
# Deterministic parameter setup + smoke test
# ---------------------------------------------------------------------------
if __name__ == "__main__":
    # Module config (gap=False dense-head branch):
    chs_in, dim_in = 4, 16
    filter_num = [8, 16]
    filter_size = [3, 3]
    nodes = [32]
    classes = 1
    dropout = 0.1                 # identity at inference

    key = jax.random.PRNGKey(0)
    ks = jax.random.split(key, 9)

    # Conv parameters, stored HWIO (KH, KW, Cin, Cout).
    conv_params = []
    chs_curr, dim_curr = chs_in, dim_in
    for li in range(len(filter_num)):
        w = 0.1 * jax.random.normal(
            ks[2 * li], (filter_size[li], filter_size[li], chs_curr, filter_num[li]),
            jnp.float32)
        b = 0.1 * jax.random.normal(ks[2 * li + 1], (filter_num[li],), jnp.float32)
        conv_params.append((w, b))
        chs_curr = filter_num[li]
        dim_curr = math.floor((dim_curr - 2) / 2)

    # Dense parameters, stored (in, out) so y = x @ W + b.
    dense_params = []
    d = dim_curr * dim_curr * chs_curr                  # 2*2*16 = 64
    ki = 4
    for n in nodes:
        w = 0.1 * jax.random.normal(ks[ki], (d, n), jnp.float32); ki += 1
        b = 0.1 * jax.random.normal(ks[ki], (n,), jnp.float32); ki += 1
        dense_params.append((w, b))
        d = n
    w = 0.1 * jax.random.normal(ks[ki], (d, classes), jnp.float32); ki += 1
    b = 0.1 * jax.random.normal(ks[ki], (classes,), jnp.float32)
    dense_params.append((w, b))

    # Example input, PyTorch NCHW convention.
    x = jax.random.normal(ks[8], (2, chs_in, dim_in, dim_in), jnp.float32)

    forward = make_detector_forward(conv_params, dense_params, x.shape)  # packs once
    out = jax.block_until_ready(forward(x))
    assert out.shape == (2, classes), out.shape
    assert bool(jnp.all(jnp.isfinite(out)))

    ref = _reference_forward(x, conv_params, dense_params)
    # bf16 MXU operands (f32 accumulation): allow bf16 operand-quantization error.
    assert bool(jnp.allclose(out, ref, atol=3e-2, rtol=3e-2)), \
        float(jnp.max(jnp.abs(out - ref)))
    print("KERNEL_OK")
</pallas_src>

<mosaic_0001>
module attributes {stable_mosaic.version = 11 : i64} {
  func.func @kernel(%arg0: i32, %arg1: memref<1x200x128xbf16, #tpu.memory_space<vmem>>, %arg2: memref<128x128xbf16, #tpu.memory_space<vmem>>, %arg3: memref<1x128xf32, #tpu.memory_space<vmem>>, %arg4: memref<9x128x128xbf16, #tpu.memory_space<vmem>>, %arg5: memref<1x128xf32, #tpu.memory_space<vmem>>, %arg6: memref<512x128xbf16, #tpu.memory_space<vmem>>, %arg7: memref<1x128xf32, #tpu.memory_space<vmem>>, %arg8: memref<128x128xbf16, #tpu.memory_space<vmem>>, %arg9: memref<1x128xf32, #tpu.memory_space<vmem>>, %arg10: memref<1x8x128xf32, #tpu.memory_space<vmem>>, %arg11: memref<200x128xf32, #tpu.memory_space<vmem>>, %arg12: memref<32x128xf32, #tpu.memory_space<vmem>>, %arg13: memref<56x128xf32, #tpu.memory_space<vmem>>) attributes {dimension_semantics = [#tpu.dimension_semantics<parallel>], iteration_bounds = array<i64: 2>, scalar_prefetch = 0 : i64, scratch_operands = 3 : i64, tpu.core_type = #tpu.core_type<tc>, window_params = [{transform_indices = @transform_0, window_bounds = array<i64: 1, 200, 128>}, {pipeline_mode = #tpu.pipeline_mode<synchronous>, transform_indices = @transform_1, window_bounds = array<i64: 128, 128>}, {pipeline_mode = #tpu.pipeline_mode<synchronous>, transform_indices = @transform_2, window_bounds = array<i64: 1, 128>}, {pipeline_mode = #tpu.pipeline_mode<synchronous>, transform_indices = @transform_3, window_bounds = array<i64: 9, 128, 128>}, {pipeline_mode = #tpu.pipeline_mode<synchronous>, transform_indices = @transform_4, window_bounds = array<i64: 1, 128>}, {pipeline_mode = #tpu.pipeline_mode<synchronous>, transform_indices = @transform_5, window_bounds = array<i64: 512, 128>}, {pipeline_mode = #tpu.pipeline_mode<synchronous>, transform_indices = @transform_6, window_bounds = array<i64: 1, 128>}, {pipeline_mode = #tpu.pipeline_mode<synchronous>, transform_indices = @transform_7, window_bounds = array<i64: 128, 128>}, {pipeline_mode = #tpu.pipeline_mode<synchronous>, transform_indices = @transform_8, window_bounds = array<i64: 1, 128>}, {transform_indices = @transform_9, window_bounds = array<i64: 1, 8, 128>}]} {
    %c0 = arith.constant 0 : index
    %c0_0 = arith.constant 0 : index
    %c0_1 = arith.constant 0 : index
    %0 = vector.load %arg1[%c0, %c0_0, %c0_1] : memref<1x200x128xbf16, #tpu.memory_space<vmem>>, vector<1x200x128xbf16>
    %1 = vector.shape_cast %0 : vector<1x200x128xbf16> to vector<200x128xbf16>
    %c0_2 = arith.constant 0 : index
    %c0_3 = arith.constant 0 : index
    %2 = vector.load %arg2[%c0_2, %c0_3] : memref<128x128xbf16, #tpu.memory_space<vmem>>, vector<128x128xbf16>
    %cst = arith.constant dense<0.000000e+00> : vector<200x128xf32>
    %3 = tpu.matmul %1, %2, %cst {dimension_numbers = #tpu.dot_dimension_numbers<[1], [0], [0], [1], [0, 0, 1, 1], [], []>} : vector<200x128xbf16>, vector<128x128xbf16>, vector<200x128xf32> -> vector<200x128xf32>
    %c0_4 = arith.constant 0 : index
    %c0_5 = arith.constant 0 : index
    %4 = vector.load %arg3[%c0_4, %c0_5] : memref<1x128xf32, #tpu.memory_space<vmem>>, vector<1x128xf32>
    %5 = vector.broadcast %4 : vector<1x128xf32> to vector<200x128xf32>
    %6 = arith.addf %3, %5 : vector<200x128xf32>
    %cst_6 = arith.constant 0.000000e+00 : f32
    %7 = vector.broadcast %cst_6 : f32 to vector<200x128xf32>
    %8 = arith.maximumf %6, %7 : vector<200x128xf32>
    %c0_7 = arith.constant 0 : index
    %c0_8 = arith.constant 0 : index
    %9 = vector.load %arg11[%c0_7, %c0_8] : memref<200x128xf32, #tpu.memory_space<vmem>>, vector<200x128xf32>
    tpu.vector_store %arg11[%c0_7, %c0_8], %8 {strides = array<i32>} : memref<200x128xf32, #tpu.memory_space<vmem>>, vector<200x128xf32>,
    %cst_9 = arith.constant 0.000000e+00 : f32
    %10 = vector.broadcast %cst_9 : f32 to vector<56x128xf32>
    %c0_10 = arith.constant 0 : index
    %c0_11 = arith.constant 0 : index
    %11 = vector.load %arg13[%c0_10, %c0_11] : memref<56x128xf32, #tpu.memory_space<vmem>>, vector<56x128xf32>
    tpu.vector_store %arg13[%c0_10, %c0_11], %10 {strides = array<i32>} : memref<56x128xf32, #tpu.memory_space<vmem>>, vector<56x128xf32>,
    %c0_12 = arith.constant 0 : index
    %c0_13 = arith.constant 0 : index
    %12 = tpu.strided_load %arg11[%c0_12, %c0_13] {strides = array<i32: 2, 1>} : memref<200x128xf32, #tpu.memory_space<vmem>>, vector<7x128xf32>
    %c1 = arith.constant 1 : index
    %c0_14 = arith.constant 0 : index
    %13 = tpu.strided_load %arg11[%c1, %c0_14] {strides = array<i32: 2, 1>} : memref<200x128xf32, #tpu.memory_space<vmem>>, vector<7x128xf32>
    %c14 = arith.constant 14 : index
    %c0_15 = arith.constant 0 : index
    %14 = tpu.strided_load %arg11[%c14, %c0_15] {strides = array<i32: 2, 1>} : memref<200x128xf32, #tpu.memory_space<vmem>>, vector<7x128xf32>
    %c15 = arith.constant 15 : index
    %c0_16 = arith.constant 0 : index
    %15 = tpu.strided_load %arg11[%c15, %c0_16] {strides = array<i32: 2, 1>} : memref<200x128xf32, #tpu.memory_space<vmem>>, vector<7x128xf32>
    %16 = arith.maximumf %12, %13 : vector<7x128xf32>
    %17 = arith.maximumf %14, %15 : vector<7x128xf32>
    %18 = arith.maximumf %16, %17 : vector<7x128xf32>
    %c0_17 = arith.constant 0 : index
    %c0_18 = arith.constant 0 : index
    %19 = vector.load %arg13[%c0_17, %c0_18] : memref<56x128xf32, #tpu.memory_space<vmem>>, vector<7x128xf32>
    tpu.vector_store %arg13[%c0_17, %c0_18], %18 {strides = array<i32>} : memref<56x128xf32, #tpu.memory_space<vmem>>, vector<7x128xf32>,
    %c28 = arith.constant 28 : index
    %c0_19 = arith.constant 0 : index
    %20 = tpu.strided_load %arg11[%c28, %c0_19] {strides = array<i32: 2, 1>} : memref<200x128xf32, #tpu.memory_space<vmem>>, vector<7x128xf32>
    %c29 = arith.constant 29 : index
    %c0_20 = arith.constant 0 : index
    %21 = tpu.strided_load %arg11[%c29, %c0_20] {strides = array<i32: 2, 1>} : memref<200x128xf32, #tpu.memory_space<vmem>>, vector<7x128xf32>
    %c42 = arith.constant 42 : index
    %c0_21 = arith.constant 0 : index
    %22 = tpu.strided_load %arg11[%c42, %c0_21] {strides = array<i32: 2, 1>} : memref<200x128xf32, #tpu.memory_space<vmem>>, vector<7x128xf32>
    %c43 = arith.constant 43 : index
    %c0_22 = arith.constant 0 : index
    %23 = tpu.strided_load %arg11[%c43, %c0_22] {strides = array<i32: 2, 1>} : memref<200x128xf32, #tpu.memory_space<vmem>>, vector<7x128xf32>
    %24 = arith.maximumf %20, %21 : vector<7x128xf32>
    %25 = arith.maximumf %22, %23 : vector<7x128xf32>
    %26 = arith.maximumf %24, %25 : vector<7x128xf32>
    %c7 = arith.constant 7 : index
    %c0_23 = arith.constant 0 : index
    %27 = vector.load %arg13[%c7, %c0_23] : memref<56x128xf32, #tpu.memory_space<vmem>>, vector<7x128xf32>
    tpu.vector_store %arg13[%c7, %c0_23], %26 {strides = array<i32>} : memref<56x128xf32, #tpu.memory_space<vmem>>, vector<7x128xf32>,
    %c56 = arith.constant 56 : index
    %c0_24 = arith.constant 0 : index
    %28 = tpu.strided_load %arg11[%c56, %c0_24] {strides = array<i32: 2, 1>} : memref<200x128xf32, #tpu.memory_space<vmem>>, vector<7x128xf32>
    %c57 = arith.constant 57 : index
    %c0_25 = arith.constant 0 : index
    %29 = tpu.strided_load %arg11[%c57, %c0_25] {strides = array<i32: 2, 1>} : memref<200x128xf32, #tpu.memory_space<vmem>>, vector<7x128xf32>
    %c70 = arith.constant 70 : index
    %c0_26 = arith.constant 0 : index
    %30 = tpu.strided_load %arg11[%c70, %c0_26] {strides = array<i32: 2, 1>} : memref<200x128xf32, #tpu.memory_space<vmem>>, vector<7x128xf32>
    %c71 = arith.constant 71 : index
    %c0_27 = arith.constant 0 : index
    %31 = tpu.strided_load %arg11[%c71, %c0_27] {strides = array<i32: 2, 1>} : memref<200x128xf32, #tpu.memory_space<vmem>>, vector<7x128xf32>
    %32 = arith.maximumf %28, %29 : vector<7x128xf32>
    %33 = arith.maximumf %30, %31 : vector<7x128xf32>
    %34 = arith.maximumf %32, %33 : vector<7x128xf32>
    %c14_28 = arith.constant 14 : index
    %c0_29 = arith.constant 0 : index
    %35 = vector.load %arg13[%c14_28, %c0_29] : memref<56x128xf32, #tpu.memory_space<vmem>>, vector<7x128xf32>
    tpu.vector_store %arg13[%c14_28, %c0_29], %34 {strides = array<i32>} : memref<56x128xf32, #tpu.memory_space<vmem>>, vector<7x128xf32>,
    %c84 = arith.constant 84 : index
    %c0_30 = arith.constant 0 : index
    %36 = tpu.strided_load %arg11[%c84, %c0_30] {strides = array<i32: 2, 1>} : memref<200x128xf32, #tpu.memory_space<vmem>>, vector<7x128xf32>
    %c85 = arith.constant 85 : index
    %c0_31 = arith.constant 0 : index
    %37 = tpu.strided_load %arg11[%c85, %c0_31] {strides = array<i32: 2, 1>} : memref<200x128xf32, #tpu.memory_space<vmem>>, vector<7x128xf32>
    %c98 = arith.constant 98 : index
    %c0_32 = arith.constant 0 : index
    %38 = tpu.strided_load %arg11[%c98, %c0_32] {strides = array<i32: 2, 1>} : memref<200x128xf32, #tpu.memory_space<vmem>>, vector<7x128xf32>
    %c99 = arith.constant 99 : index
    %c0_33 = arith.constant 0 : index
    %39 = tpu.strided_load %arg11[%c99, %c0_33] {strides = array<i32: 2, 1>} : memref<200x128xf32, #tpu.memory_space<vmem>>, vector<7x128xf32>
    %40 = arith.maximumf %36, %37 : vector<7x128xf32>
    %41 = arith.maximumf %38, %39 : vector<7x128xf32>
    %42 = arith.maximumf %40, %41 : vector<7x128xf32>
    %c21 = arith.constant 21 : index
    %c0_34 = arith.constant 0 : index
    %43 = vector.load %arg13[%c21, %c0_34] : memref<56x128xf32, #tpu.memory_space<vmem>>, vector<7x128xf32>
    tpu.vector_store %arg13[%c21, %c0_34], %42 {strides = array<i32>} : memref<56x128xf32, #tpu.memory_space<vmem>>, vector<7x128xf32>,
    %c112 = arith.constant 112 : index
    %c0_35 = arith.constant 0 : index
    %44 = tpu.strided_load %arg11[%c112, %c0_35] {strides = array<i32: 2, 1>} : memref<200x128xf32, #tpu.memory_space<vmem>>, vector<7x128xf32>
    %c113 = arith.constant 113 : index
    %c0_36 = arith.constant 0 : index
    %45 = tpu.strided_load %arg11[%c113, %c0_36] {strides = array<i32: 2, 1>} : memref<200x128xf32, #tpu.memory_space<vmem>>, vector<7x128xf32>
    %c126 = arith.constant 126 : index
    %c0_37 = arith.constant 0 : index
    %46 = tpu.strided_load %arg11[%c126, %c0_37] {strides = array<i32: 2, 1>} : memref<200x128xf32, #tpu.memory_space<vmem>>, vector<7x128xf32>
    %c127 = arith.constant 127 : index
    %c0_38 = arith.constant 0 : index
    %47 = tpu.strided_load %arg11[%c127, %c0_38] {strides = array<i32: 2, 1>} : memref<200x128xf32, #tpu.memory_space<vmem>>, vector<7x128xf32>
    %48 = arith.maximumf %44, %45 : vector<7x128xf32>
    %49 = arith.maximumf %46, %47 : vector<7x128xf32>
    %50 = arith.maximumf %48, %49 : vector<7x128xf32>
    %c28_39 = arith.constant 28 : index
    %c0_40 = arith.constant 0 : index
    %51 = vector.load %arg13[%c28_39, %c0_40] : memref<56x128xf32, #tpu.memory_space<vmem>>, vector<7x128xf32>
    tpu.vector_store %arg13[%c28_39, %c0_40], %50 {strides = array<i32>} : memref<56x128xf32, #tpu.memory_space<vmem>>, vector<7x128xf32>,
    %c140 = arith.constant 140 : index
    %c0_41 = arith.constant 0 : index
    %52 = tpu.strided_load %arg11[%c140, %c0_41] {strides = array<i32: 2, 1>} : memref<200x128xf32, #tpu.memory_space<vmem>>, vector<7x128xf32>
    %c141 = arith.constant 141 : index
    %c0_42 = arith.constant 0 : index
    %53 = tpu.strided_load %arg11[%c141, %c0_42] {strides = array<i32: 2, 1>} : memref<200x128xf32, #tpu.memory_space<vmem>>, vector<7x128xf32>
    %c154 = arith.constant 154 : index
    %c0_43 = arith.constant 0 : index
    %54 = tpu.strided_load %arg11[%c154, %c0_43] {strides = array<i32: 2, 1>} : memref<200x128xf32, #tpu.memory_space<vmem>>, vector<7x128xf32>
    %c155 = arith.constant 155 : index
    %c0_44 = arith.constant 0 : index
    %55 = tpu.strided_load %arg11[%c155, %c0_44] {strides = array<i32: 2, 1>} : memref<200x128xf32, #tpu.memory_space<vmem>>, vector<7x128xf32>
    %56 = arith.maximumf %52, %53 : vector<7x128xf32>
    %57 = arith.maximumf %54, %55 : vector<7x128xf32>
    %58 = arith.maximumf %56, %57 : vector<7x128xf32>
    %c35 = arith.constant 35 : index
    %c0_45 = arith.constant 0 : index
    %59 = vector.load %arg13[%c35, %c0_45] : memref<56x128xf32, #tpu.memory_space<vmem>>, vector<7x128xf32>
    tpu.vector_store %arg13[%c35, %c0_45], %58 {strides = array<i32>} : memref<56x128xf32, #tpu.memory_space<vmem>>, vector<7x128xf32>,
    %c168 = arith.constant 168 : index
    %c0_46 = arith.constant 0 : index
    %60 = tpu.strided_load %arg11[%c168, %c0_46] {strides = array<i32: 2, 1>} : memref<200x128xf32, #tpu.memory_space<vmem>>, vector<7x128xf32>
    %c169 = arith.constant 169 : index
    %c0_47 = arith.constant 0 : index
    %61 = tpu.strided_load %arg11[%c169, %c0_47] {strides = array<i32: 2, 1>} : memref<200x128xf32, #tpu.memory_space<vmem>>, vector<7x128xf32>
    %c182 = arith.constant 182 : index
    %c0_48 = arith.constant 0 : index
    %62 = tpu.strided_load %arg11[%c182, %c0_48] {strides = array<i32: 2, 1>} : memref<200x128xf32, #tpu.memory_space<vmem>>, vector<7x128xf32>
    %c183 = arith.constant 183 : index
    %c0_49 = arith.constant 0 : index
    %63 = tpu.strided_load %arg11[%c183, %c0_49] {strides = array<i32: 2, 1>} : memref<200x128xf32, #tpu.memory_space<vmem>>, vector<7x128xf32>
    %64 = arith.maximumf %60, %61 : vector<7x128xf32>
    %65 = arith.maximumf %62, %63 : vector<7x128xf32>
    %66 = arith.maximumf %64, %65 : vector<7x128xf32>
    %c42_50 = arith.constant 42 : index
    %c0_51 = arith.constant 0 : index
    %67 = vector.load %arg13[%c42_50, %c0_51] : memref<56x128xf32, #tpu.memory_space<vmem>>, vector<7x128xf32>
    tpu.vector_store %arg13[%c42_50, %c0_51], %66 {strides = array<i32>} : memref<56x128xf32, #tpu.memory_space<vmem>>, vector<7x128xf32>,
    %c0_52 = arith.constant 0 : index
    %c0_53 = arith.constant 0 : index
    %68 = vector.load %arg13[%c0_52, %c0_53] : memref<56x128xf32, #tpu.memory_space<vmem>>, vector<32x128xf32>
    %69 = arith.truncf %68 : vector<32x128xf32> to vector<32x128xbf16>
    %c0_54 = arith.constant 0 : index
    %c0_55 = arith.constant 0 : index
    %c0_56 = arith.constant 0 : index
    %70 = vector.load %arg4[%c0_54, %c0_55, %c0_56] : memref<9x128x128xbf16, #tpu.memory_space<vmem>>, vector<1x128x128xbf16>
    %71 = vector.shape_cast %70 : vector<1x128x128xbf16> to vector<128x128xbf16>
    %cst_57 = arith.constant dense<0.000000e+00> : vector<32x128xf32>
    %72 = tpu.matmul %69, %71, %cst_57 {dimension_numbers = #tpu.dot_dimension_numbers<[1], [0], [0], [1], [0, 0, 1, 1], [], []>} : vector<32x128xbf16>, vector<128x128xbf16>, vector<32x128xf32> -> vector<32x128xf32>
    %c1_58 = arith.constant 1 : index
    %c0_59 = arith.constant 0 : index
    %73 = vector.load %arg13[%c1_58, %c0_59] : memref<56x128xf32, #tpu.memory_space<vmem>>, vector<32x128xf32>
    %74 = arith.truncf %73 : vector<32x128xf32> to vector<32x128xbf16>
    %c1_60 = arith.constant 1 : index
    %c0_61 = arith.constant 0 : index
    %c0_62 = arith.constant 0 : index
    %75 = vector.load %arg4[%c1_60, %c0_61, %c0_62] : memref<9x128x128xbf16, #tpu.memory_space<vmem>>, vector<1x128x128xbf16>
    %76 = vector.shape_cast %75 : vector<1x128x128xbf16> to vector<128x128xbf16>
    %cst_63 = arith.constant dense<0.000000e+00> : vector<32x128xf32>
    %77 = tpu.matmul %74, %76, %cst_63 {dimension_numbers = #tpu.dot_dimension_numbers<[1], [0], [0], [1], [0, 0, 1, 1], [], []>} : vector<32x128xbf16>, vector<128x128xbf16>, vector<32x128xf32> -> vector<32x128xf32>
    %78 = arith.addf %72, %77 : vector<32x128xf32>
    %c2 = arith.constant 2 : index
    %c0_64 = arith.constant 0 : index
    %79 = vector.load %arg13[%c2, %c0_64] : memref<56x128xf32, #tpu.memory_space<vmem>>, vector<32x128xf32>
    %80 = arith.truncf %79 : vector<32x128xf32> to vector<32x128xbf16>
    %c2_65 = arith.constant 2 : index
    %c0_66 = arith.constant 0 : index
    %c0_67 = arith.constant 0 : index
    %81 = vector.load %arg4[%c2_65, %c0_66, %c0_67] : memref<9x128x128xbf16, #tpu.memory_space<vmem>>, vector<1x128x128xbf16>
    %82 = vector.shape_cast %81 : vector<1x128x128xbf16> to vector<128x128xbf16>
    %cst_68 = arith.constant dense<0.000000e+00> : vector<32x128xf32>
    %83 = tpu.matmul %80, %82, %cst_68 {dimension_numbers = #tpu.dot_dimension_numbers<[1], [0], [0], [1], [0, 0, 1, 1], [], []>} : vector<32x128xbf16>, vector<128x128xbf16>, vector<32x128xf32> -> vector<32x128xf32>
    %84 = arith.addf %78, %83 : vector<32x128xf32>
    %c7_69 = arith.constant 7 : index
    %c0_70 = arith.constant 0 : index
    %85 = vector.load %arg13[%c7_69, %c0_70] : memref<56x128xf32, #tpu.memory_space<vmem>>, vector<32x128xf32>
    %86 = arith.truncf %85 : vector<32x128xf32> to vector<32x128xbf16>
    %c3 = arith.constant 3 : index
    %c0_71 = arith.constant 0 : index
    %c0_72 = arith.constant 0 : index
    %87 = vector.load %arg4[%c3, %c0_71, %c0_72] : memref<9x128x128xbf16, #tpu.memory_space<vmem>>, vector<1x128x128xbf16>
    %88 = vector.shape_cast %87 : vector<1x128x128xbf16> to vector<128x128xbf16>
    %cst_73 = arith.constant dense<0.000000e+00> : vector<32x128xf32>
    %89 = tpu.matmul %86, %88, %cst_73 {dimension_numbers = #tpu.dot_dimension_numbers<[1], [0], [0], [1], [0, 0, 1, 1], [], []>} : vector<32x128xbf16>, vector<128x128xbf16>, vector<32x128xf32> -> vector<32x128xf32>
    %90 = arith.addf %84, %89 : vector<32x128xf32>
    %c8 = arith.constant 8 : index
    %c0_74 = arith.constant 0 : index
    %91 = vector.load %arg13[%c8, %c0_74] : memref<56x128xf32, #tpu.memory_space<vmem>>, vector<32x128xf32>
    %92 = arith.truncf %91 : vector<32x128xf32> to vector<32x128xbf16>
    %c4 = arith.constant 4 : index
    %c0_75 = arith.constant 0 : index
    %c0_76 = arith.constant 0 : index
    %93 = vector.load %arg4[%c4, %c0_75, %c0_76] : memref<9x128x128xbf16, #tpu.memory_space<vmem>>, vector<1x128x128xbf16>
    %94 = vector.shape_cast %93 : vector<1x128x128xbf16> to vector<128x128xbf16>
    %cst_77 = arith.constant dense<0.000000e+00> : vector<32x128xf32>
    %95 = tpu.matmul %92, %94, %cst_77 {dimension_numbers = #tpu.dot_dimension_numbers<[1], [0], [0], [1], [0, 0, 1, 1], [], []>} : vector<32x128xbf16>, vector<128x128xbf16>, vector<32x128xf32> -> vector<32x128xf32>
    %96 = arith.addf %90, %95 : vector<32x128xf32>
    %c9 = arith.constant 9 : index
    %c0_78 = arith.constant 0 : index
    %97 = vector.load %arg13[%c9, %c0_78] : memref<56x128xf32, #tpu.memory_space<vmem>>, vector<32x128xf32>
    %98 = arith.truncf %97 : vector<32x128xf32> to vector<32x128xbf16>
    %c5 = arith.constant 5 : index
    %c0_79 = arith.constant 0 : index
    %c0_80 = arith.constant 0 : index
    %99 = vector.load %arg4[%c5, %c0_79, %c0_80] : memref<9x128x128xbf16, #tpu.memory_space<vmem>>, vector<1x128x128xbf16>
    %100 = vector.shape_cast %99 : vector<1x128x128xbf16> to vector<128x128xbf16>
    %cst_81 = arith.constant dense<0.000000e+00> : vector<32x128xf32>
    %101 = tpu.matmul %98, %100, %cst_81 {dimension_numbers = #tpu.dot_dimension_numbers<[1], [0], [0], [1], [0, 0, 1, 1], [], []>} : vector<32x128xbf16>, vector<128x128xbf16>, vector<32x128xf32> -> vector<32x128xf32>
    %102 = arith.addf %96, %101 : vector<32x128xf32>
    %c14_82 = arith.constant 14 : index
    %c0_83 = arith.constant 0 : index
    %103 = vector.load %arg13[%c14_82, %c0_83] : memref<56x128xf32, #tpu.memory_space<vmem>>, vector<32x128xf32>
    %104 = arith.truncf %103 : vector<32x128xf32> to vector<32x128xbf16>
    %c6 = arith.constant 6 : index
    %c0_84 = arith.constant 0 : index
    %c0_85 = arith.constant 0 : index
    %105 = vector.load %arg4[%c6, %c0_84, %c0_85] : memref<9x128x128xbf16, #tpu.memory_space<vmem>>, vector<1x128x128xbf16>
    %106 = vector.shape_cast %105 : vector<1x128x128xbf16> to vector<128x128xbf16>
    %cst_86 = arith.constant dense<0.000000e+00> : vector<32x128xf32>
    %107 = tpu.matmul %104, %106, %cst_86 {dimension_numbers = #tpu.dot_dimension_numbers<[1], [0], [0], [1], [0, 0, 1, 1], [], []>} : vector<32x128xbf16>, vector<128x128xbf16>, vector<32x128xf32> -> vector<32x128xf32>
    %108 = arith.addf %102, %107 : vector<32x128xf32>
    %c15_87 = arith.constant 15 : index
    %c0_88 = arith.constant 0 : index
    %109 = vector.load %arg13[%c15_87, %c0_88] : memref<56x128xf32, #tpu.memory_space<vmem>>, vector<32x128xf32>
    %110 = arith.truncf %109 : vector<32x128xf32> to vector<32x128xbf16>
    %c7_89 = arith.constant 7 : index
    %c0_90 = arith.constant 0 : index
    %c0_91 = arith.constant 0 : index
    %111 = vector.load %arg4[%c7_89, %c0_90, %c0_91] : memref<9x128x128xbf16, #tpu.memory_space<vmem>>, vector<1x128x128xbf16>
    %112 = vector.shape_cast %111 : vector<1x128x128xbf16> to vector<128x128xbf16>
    %cst_92 = arith.constant dense<0.000000e+00> : vector<32x128xf32>
    %113 = tpu.matmul %110, %112, %cst_92 {dimension_numbers = #tpu.dot_dimension_numbers<[1], [0], [0], [1], [0, 0, 1, 1], [], []>} : vector<32x128xbf16>, vector<128x128xbf16>, vector<32x128xf32> -> vector<32x128xf32>
    %114 = arith.addf %108, %113 : vector<32x128xf32>
    %c16 = arith.constant 16 : index
    %c0_93 = arith.constant 0 : index
    %115 = vector.load %arg13[%c16, %c0_93] : memref<56x128xf32, #tpu.memory_space<vmem>>, vector<32x128xf32>
    %116 = arith.truncf %115 : vector<32x128xf32> to vector<32x128xbf16>
    %c8_94 = arith.constant 8 : index
    %c0_95 = arith.constant 0 : index
    %c0_96 = arith.constant 0 : index
    %117 = vector.load %arg4[%c8_94, %c0_95, %c0_96] : memref<9x128x128xbf16, #tpu.memory_space<vmem>>, vector<1x128x128xbf16>
    %118 = vector.shape_cast %117 : vector<1x128x128xbf16> to vector<128x128xbf16>
    %cst_97 = arith.constant dense<0.000000e+00> : vector<32x128xf32>
    %119 = tpu.matmul %116, %118, %cst_97 {dimension_numbers = #tpu.dot_dimension_numbers<[1], [0], [0], [1], [0, 0, 1, 1], [], []>} : vector<32x128xbf16>, vector<128x128xbf16>, vector<32x128xf32> -> vector<32x128xf32>
    %120 = arith.addf %114, %119 : vector<32x128xf32>
    %c0_98 = arith.constant 0 : index
    %c0_99 = arith.constant 0 : index
    %121 = vector.load %arg5[%c0_98, %c0_99] : memref<1x128xf32, #tpu.memory_space<vmem>>, vector<1x128xf32>
    %122 = vector.broadcast %121 : vector<1x128xf32> to vector<32x128xf32>
    %123 = arith.addf %120, %122 : vector<32x128xf32>
    %cst_100 = arith.constant 0.000000e+00 : f32
    %124 = vector.broadcast %cst_100 : f32 to vector<32x128xf32>
    %125 = arith.maximumf %123, %124 : vector<32x128xf32>
    %c0_101 = arith.constant 0 : index
    %c0_102 = arith.constant 0 : index
    %126 = vector.load %arg12[%c0_101, %c0_102] : memref<32x128xf32, #tpu.memory_space<vmem>>, vector<32x128xf32>
    tpu.vector_store %arg12[%c0_101, %c0_102], %125 {strides = array<i32>} : memref<32x128xf32, #tpu.memory_space<vmem>>, vector<32x128xf32>,
    %c0_103 = arith.constant 0 : index
    %c0_104 = arith.constant 0 : index
    %127 = tpu.strided_load %arg12[%c0_103, %c0_104] {strides = array<i32: 2, 1>} : memref<32x128xf32, #tpu.memory_space<vmem>>, vector<2x128xf32>
    %c1_105 = arith.constant 1 : index
    %c0_106 = arith.constant 0 : index
    %128 = tpu.strided_load %arg12[%c1_105, %c0_106] {strides = array<i32: 2, 1>} : memref<32x128xf32, #tpu.memory_space<vmem>>, vector<2x128xf32>
    %c7_107 = arith.constant 7 : index
    %c0_108 = arith.constant 0 : index
    %129 = tpu.strided_load %arg12[%c7_107, %c0_108] {strides = array<i32: 2, 1>} : memref<32x128xf32, #tpu.memory_space<vmem>>, vector<2x128xf32>
    %c8_109 = arith.constant 8 : index
    %c0_110 = arith.constant 0 : index
    %130 = tpu.strided_load %arg12[%c8_109, %c0_110] {strides = array<i32: 2, 1>} : memref<32x128xf32, #tpu.memory_space<vmem>>, vector<2x128xf32>
    %131 = arith.maximumf %127, %128 : vector<2x128xf32>
    %132 = arith.maximumf %129, %130 : vector<2x128xf32>
    %133 = arith.maximumf %131, %132 : vector<2x128xf32>
    %134 = vector.extract_strided_slice %133 {offsets = [0, 0], sizes = [1, 128], strides = [1, 1]} : vector<2x128xf32> to vector<1x128xf32>
    %135 = vector.extract_strided_slice %133 {offsets = [1, 0], sizes = [1, 128], strides = [1, 1]} : vector<2x128xf32> to vector<1x128xf32>
    %c14_111 = arith.constant 14 : index
    %c0_112 = arith.constant 0 : index
    %136 = tpu.strided_load %arg12[%c14_111, %c0_112] {strides = array<i32: 2, 1>} : memref<32x128xf32, #tpu.memory_space<vmem>>, vector<2x128xf32>
    %c15_113 = arith.constant 15 : index
    %c0_114 = arith.constant 0 : index
    %137 = tpu.strided_load %arg12[%c15_113, %c0_114] {strides = array<i32: 2, 1>} : memref<32x128xf32, #tpu.memory_space<vmem>>, vector<2x128xf32>
    %c21_115 = arith.constant 21 : index
    %c0_116 = arith.constant 0 : index
    %138 = tpu.strided_load %arg12[%c21_115, %c0_116] {strides = array<i32: 2, 1>} : memref<32x128xf32, #tpu.memory_space<vmem>>, vector<2x128xf32>
    %c22 = arith.constant 22 : index
    %c0_117 = arith.constant 0 : index
    %139 = tpu.strided_load %arg12[%c22, %c0_117] {strides = array<i32: 2, 1>} : memref<32x128xf32, #tpu.memory_space<vmem>>, vector<2x128xf32>
    %140 = arith.maximumf %136, %137 : vector<2x128xf32>
    %141 = arith.maximumf %138, %139 : vector<2x128xf32>
    %142 = arith.maximumf %140, %141 : vector<2x128xf32>
    %143 = vector.extract_strided_slice %142 {offsets = [0, 0], sizes = [1, 128], strides = [1, 1]} : vector<2x128xf32> to vector<1x128xf32>
    %144 = vector.extract_strided_slice %142 {offsets = [1, 0], sizes = [1, 128], strides = [1, 1]} : vector<2x128xf32> to vector<1x128xf32>
    %145 = tpu.concatenate %134, %135, %143, %144 in 1 : vector<1x128xf32>, vector<1x128xf32>, vector<1x128xf32>, vector<1x128xf32> -> vector<1x512xf32>
    %146 = vector.shape_cast %145 : vector<1x512xf32> to vector<1x512xf32>
    %147 = vector.broadcast %146 : vector<1x512xf32> to vector<8x512xf32>
    %148 = arith.truncf %147 : vector<8x512xf32> to vector<8x512xbf16>
    %c0_118 = arith.constant 0 : index
    %c0_119 = arith.constant 0 : index
    %149 = vector.load %arg6[%c0_118, %c0_119] : memref<512x128xbf16, #tpu.memory_space<vmem>>, vector<512x128xbf16>
    %cst_120 = arith.constant dense<0.000000e+00> : vector<8x128xf32>
    %150 = tpu.matmul %148, %149, %cst_120 {dimension_numbers = #tpu.dot_dimension_numbers<[1], [0], [0], [1], [0, 0, 1, 1], [], []>} : vector<8x512xbf16>, vector<512x128xbf16>, vector<8x128xf32> -> vector<8x128xf32>
    %c0_121 = arith.constant 0 : index
    %c0_122 = arith.constant 0 : index
    %151 = vector.load %arg7[%c0_121, %c0_122] : memref<1x128xf32, #tpu.memory_space<vmem>>, vector<1x128xf32>
    %152 = vector.broadcast %151 : vector<1x128xf32> to vector<8x128xf32>
    %153 = arith.addf %150, %152 : vector<8x128xf32>
    %cst_123 = arith.constant 0.000000e+00 : f32
    %154 = vector.broadcast %cst_123 : f32 to vector<8x128xf32>
    %155 = arith.maximumf %153, %154 : vector<8x128xf32>
    %156 = arith.truncf %155 : vector<8x128xf32> to vector<8x128xbf16>
    %c0_124 = arith.constant 0 : index
    %c0_125 = arith.constant 0 : index
    %157 = vector.load %arg8[%c0_124, %c0_125] : memref<128x128xbf16, #tpu.memory_space<vmem>>, vector<128x128xbf16>
    %cst_126 = arith.constant dense<0.000000e+00> : vector<8x128xf32>
    %158 = tpu.matmul %156, %157, %cst_126 {dimension_numbers = #tpu.dot_dimension_numbers<[1], [0], [0], [1], [0, 0, 1, 1], [], []>} : vector<8x128xbf16>, vector<128x128xbf16>, vector<8x128xf32> -> vector<8x128xf32>
    %c0_127 = arith.constant 0 : index
    %c0_128 = arith.constant 0 : index
    %159 = vector.load %arg9[%c0_127, %c0_128] : memref<1x128xf32, #tpu.memory_space<vmem>>, vector<1x128xf32>
    %160 = vector.broadcast %159 : vector<1x128xf32> to vector<8x128xf32>
    %161 = arith.addf %158, %160 : vector<8x128xf32>
    %c0_129 = arith.constant 0 : index
    %c0_130 = arith.constant 0 : index
    %c0_131 = arith.constant 0 : index
    %162 = vector.load %arg10[%c0_129, %c0_130, %c0_131] : memref<1x8x128xf32, #tpu.memory_space<vmem>>, vector<1x8x128xf32>
    %163 = vector.shape_cast %162 : vector<1x8x128xf32> to vector<8x128xf32>
    %164 = vector.shape_cast %161 : vector<8x128xf32> to vector<1x8x128xf32>
    tpu.vector_store %arg10[%c0_129, %c0_130, %c0_131], %164 {strides = array<i32>} : memref<1x8x128xf32, #tpu.memory_space<vmem>>, vector<1x8x128xf32>,
    return
  }
  func.func @transform_0(%arg0: i32) -> (i32, i32, i32) {
    %c0_i32 = arith.constant 0 : i32
    %c0_i32_0 = arith.constant 0 : i32
    %c0_i32_1 = arith.constant 0 : i32
    return %arg0, %c0_i32, %c0_i32_0 : i32, i32, i32
  }
  func.func @transform_1(%arg0: i32) -> (i32, i32) {
    %c0_i32 = arith.constant 0 : i32
    %c0_i32_0 = arith.constant 0 : i32
    %c0_i32_1 = arith.constant 0 : i32
    return %c0_i32, %c0_i32_0 : i32, i32
  }
  func.func @transform_2(%arg0: i32) -> (i32, i32) {
    %c0_i32 = arith.constant 0 : i32
    %c0_i32_0 = arith.constant 0 : i32
    %c0_i32_1 = arith.constant 0 : i32
    return %c0_i32, %c0_i32_0 : i32, i32
  }
  func.func @transform_3(%arg0: i32) -> (i32, i32, i32) {
    %c0_i32 = arith.constant 0 : i32
    %c0_i32_0 = arith.constant 0 : i32
    %c0_i32_1 = arith.constant 0 : i32
    %c0_i32_2 = arith.constant 0 : i32
    return %c0_i32, %c0_i32_0, %c0_i32_1 : i32, i32, i32
  }
  func.func @transform_4(%arg0: i32) -> (i32, i32) {
    %c0_i32 = arith.constant 0 : i32
    %c0_i32_0 = arith.constant 0 : i32
    %c0_i32_1 = arith.constant 0 : i32
    return %c0_i32, %c0_i32_0 : i32, i32
  }
  func.func @transform_5(%arg0: i32) -> (i32, i32) {
    %c0_i32 = arith.constant 0 : i32
    %c0_i32_0 = arith.constant 0 : i32
    %c0_i32_1 = arith.constant 0 : i32
    return %c0_i32, %c0_i32_0 : i32, i32
  }
  func.func @transform_6(%arg0: i32) -> (i32, i32) {
    %c0_i32 = arith.constant 0 : i32
    %c0_i32_0 = arith.constant 0 : i32
    %c0_i32_1 = arith.constant 0 : i32
    return %c0_i32, %c0_i32_0 : i32, i32
  }
  func.func @transform_7(%arg0: i32) -> (i32, i32) {
    %c0_i32 = arith.constant 0 : i32
    %c0_i32_0 = arith.constant 0 : i32
    %c0_i32_1 = arith.constant 0 : i32
    return %c0_i32, %c0_i32_0 : i32, i32
  }
  func.func @transform_8(%arg0: i32) -> (i32, i32) {
    %c0_i32 = arith.constant 0 : i32
    %c0_i32_0 = arith.constant 0 : i32
    %c0_i32_1 = arith.constant 0 : i32
    return %c0_i32, %c0_i32_0 : i32, i32
  }
  func.func @transform_9(%arg0: i32) -> (i32, i32, i32) {
    %c0_i32 = arith.constant 0 : i32
    %c0_i32_0 = arith.constant 0 : i32
    %c0_i32_1 = arith.constant 0 : i32
    return %arg0, %c0_i32, %c0_i32_0 : i32, i32, i32
  }
}

</mosaic_0001>

<bundles_post_ra>
// kernel: fwd.1
= control target key start
LH: loop header
LB: loop body
LE: loop exit
PB: predicated region body
PF: predicated region fallthrough
CT: control target
= control target key end

     0   :  { %s2928_s30 = smov 0   ;;  %s3420_s0 = inlined_call_operand.vmem [shape: bf16[2,200,128], index: 0, kind: input, shape index: {}]   ;;  %s3421_s1 = inlined_call_operand.vmem [shape: bf16[128,128], index: 1, kind: input, shape index: {}]   ;;  %s3422_s2 = inlined_call_operand.vmem [shape: f32[1,128], index: 2, kind: input, shape index: {}]   ;;  %s3423_s3 = inlined_call_operand.vmem [shape: bf16[9,128,128], index: 3, kind: input, shape index: {}]   ;;  %s3424_s4 = inlined_call_operand.vmem [shape: f32[1,128], index: 4, kind: input, shape index: {}]   ;;  %s3425_s5 = inlined_call_operand.vmem [shape: bf16[512,128], index: 5, kind: input, shape index: {}]   ;;  %s3426_s6 = inlined_call_operand.vmem [shape: f32[1,128], index: 6, kind: input, shape index: {}]   ;;  %s3427_s7 = inlined_call_operand.vmem [shape: bf16[128,128], index: 7, kind: input, shape index: {}]   ;;  %s3428_s8 = inlined_call_operand.vmem [shape: f32[1,128], index: 8, kind: input, shape index: {}]   ;;  %s3429_s9 = inlined_call_operand.vmem [shape: f32[2,8,128], index: 9, kind: output, shape index: {}]  }
   0x1 LB: > { %s2050_s10 = sadd.s32 4294967295, %s2875_s30   ;;  %p2054_p0 = scmp.ge.s32.totalorder %s2875_s30, 1  ;;  %s2875_s30 = sphi %s2928_s30, %s19_s30  }
   0x2   : > { %p287_p1 = scmp.lt.s32.totalorder %s2875_s30, 3 }
   0x4   : > { %p288_p2 = pnand %p2054_p0, %p287_p1 }
   0x5   : > { %p322_p3 = scmp.lt.s32.totalorder (!%p288_p2), %s2050_s10, 1 }
   0x6   : > { %291 = sbr.rel (%p288_p2) target bundleno = 840 (0x348), region = 56 }
   0xb   : > { %v2734_v0 = vld [vmem:[%s3421_s1 + $0x38] sm:$0xff]  ;;  %v2733_v1 = vld [vmem:[%s3421_s1 + $0x30] sm:$0xff]  ;;  %v2732_v2 = vld [vmem:[%s3421_s1 + $0x28] sm:$0xff]  ;;  %s3431_s10 = smov (!%p322_p3, %s2050_s10), 1  ;;  %v2877_v27 = vmov 0.0  }
   0xc   : > { %500 = vmatpush.bf16.msra.mxu0 %v2734_v0  ;;  %2847 = vmatpush.bf16.msra.mxu3 %v2734_v0  ;;  %v2731_v3 = vld [vmem:[%s3421_s1 + $0x20] sm:$0xff]  ;;  %v2730_v4 = vld [vmem:[%s3421_s1 + $0x18] sm:$0xff]  ;;  %v2729_v5 = vld [vmem:[%s3421_s1 + $0x10] sm:$0xff]  ;;  %s2855_s25 = smul.u32 100, %s3431_s10  ;;  %623 = vst [vmem:[#allocation4] sm:$0xff] %v2877_v27  ;;  %s2056_s14 = sshll.u32 %s3431_s10, 3 }
   0xd   : > { %v2728_v6 = vld [vmem:[%s3421_s1 + $0x8] sm:$0xff]  ;;  %v2727_v7 = vld [vmem:[%s3421_s1] sm:$0xff]  ;;  %624 = vst [vmem:[#allocation4 + $0x8] sm:$0xff] %v2877_v27  ;;  %v2750_v49 = vld [vmem:[%s3423_s3 + $0x78] sm:$0xff]  ;;  %s330_s19 = scalar_lea.vmem %s3429_s9, %s2056_s14 }
   0xe   : > { %s2966_s11 = scalar_lea.vmem %s3420_s0, %s2855_s25  ;;  %v2982_v21 = vld [vmem:[%s3422_s2] ss:$0 sm:$0xff]  ;;  %625 = vst [vmem:[#allocation4 + $0x10] sm:$0xff] %v2877_v27  ;;  %v2742_v50 = vld [vmem:[%s3423_s3 + $0x38] sm:$0xff]  ;;  %806 = vmatpush.bf16.msra.mxu1 %v2750_v49  ;;  %v2749_v53 = vld [vmem:[%s3423_s3 + $0x70] sm:$0xff] }
   0xf   : > { %v2715_v8 = vld [vmem:[%s2966_s11] sm:$0xff]  ;;  %v2716_v9 = vld [vmem:[%s2966_s11 + $0x8] sm:$0xff]  ;;  %v2717_v10 = vld [vmem:[%s2966_s11 + $0x10] sm:$0xff]  ;;  %626 = vst [vmem:[#allocation4 + $0x18] sm:$0xff] %v2877_v27  ;;  %873 = vmatpush.bf16.msra.mxu2 %v2742_v50 }
  0x10   : > { %501 = vmatpush.bf16.msra.mxu0 %v2733_v1  ;;  %2848 = vmatpush.bf16.msra.mxu3 %v2733_v1  ;;  %v2718_v11 = vld [vmem:[%s2966_s11 + $0x18] sm:$0xff]  ;;  %v2719_v12 = vld [vmem:[%s2966_s11 + $0x20] sm:$0xff]  ;;  %v2720_v13 = vld [vmem:[%s2966_s11 + $0x28] sm:$0xff]  ;;  %627 = vst [vmem:[#allocation4 + $0x20] sm:$0xff] %v2877_v27 }
  0x11   : > { %v2725_v14 = vld [vmem:[%s2966_s11 + $0x50] sm:$0xff]  ;;  %v2726_v16 = vld [vmem:[%s2966_s11 + $0x58] sm:$0xff]  ;;  %v355_v18 = vld [vmem:[%s2966_s11 + $0x60] sm:$0xf]  ;;  %628 = vst [vmem:[#allocation4 + $0x28] sm:$0xff] %v2877_v27 }
  0x12   : > { %v2721_v15 = vld [vmem:[%s2966_s11 + $0x30] sm:$0xff]  ;;  %v2722_v17 = vld [vmem:[%s2966_s11 + $0x38] sm:$0xff]  ;;  %v425_v19 = vunpack.c.l.b16 %v355_v18  ;;  %v2723_v22 = vld [vmem:[%s2966_s11 + $0x40] sm:$0xff]  ;;  %807 = vmatpush.bf16.msra.mxu1 %v2749_v53 }
  0x13   : > { %v2724_v30 = vld [vmem:[%s2966_s11 + $0x48] sm:$0xff]  ;;  %v2758_v51 = vld [vmem:[%s3423_s3 + $0xb8] sm:$0xff]  ;;  %v2741_v54 = vld [vmem:[%s3423_s3 + $0x30] sm:$0xff] }
  0x14   : > { %502 = vmatpush.bf16.msra.mxu0 %v2732_v2  ;;  %2849 = vmatpush.bf16.msra.mxu3 %v2732_v2  ;;  %v438_v20 = vpack.c.b16 %v425_v19, %v425_v19  ;;  %v2757_v55 = vld [vmem:[%s3423_s3 + $0xb0] sm:$0xff]  ;;  %v2748_v58 = vld [vmem:[%s3423_s3 + $0x68] sm:$0xff]  ;;  %v2747_v62 = vld [vmem:[%s3423_s3 + $0x60] sm:$0xff] }
  0x15   : > { %874 = vmatpush.bf16.msra.mxu2 %v2741_v54  ;;  %v2740_v59 = vld [vmem:[%s3423_s3 + $0x28] sm:$0xff]  ;;  %v2739_v63 = vld [vmem:[%s3423_s3 + $0x20] sm:$0xff] }
  0x16   : > { %v2756_v60 = vld [vmem:[%s3423_s3 + $0xa8] sm:$0xff]  ;;  %808 = vmatpush.bf16.msra.mxu1 %v2748_v58  ;;  %v2755_v0 = vld [vmem:[%s3423_s3 + $0xa0] sm:$0xff] }
  0x17   : > { %v2744_v19 = vld [vmem:[%s3423_s3 + $0x48] sm:$0xff] }
  0x18   : > { %503 = vmatpush.bf16.msra.mxu0 %v2731_v3  ;;  %2850 = vmatpush.bf16.msra.mxu3 %v2731_v3 }
  0x19   : > { %875 = vmatpush.bf16.msra.mxu2 %v2740_v59 }
  0x1a   : > { %809 = vmatpush.bf16.msra.mxu1 %v2747_v62 }
  0x1c   : > { %504 = vmatpush.bf16.msra.mxu0 %v2730_v4  ;;  %2851 = vmatpush.bf16.msra.mxu3 %v2730_v4 }
  0x1d   : > { %876 = vmatpush.bf16.msra.mxu2 %v2739_v63 }
  0x20   : > { %505 = vmatpush.bf16.msra.mxu0 %v2729_v5  ;;  %2852 = vmatpush.bf16.msra.mxu3 %v2729_v5  ;;  %v2746_v5 = vld [vmem:[%s3423_s3 + $0x58] sm:$0xff] }
  0x21   : > { %810 = vmatpush.bf16.msra.mxu1 %v2746_v5 }
  0x24   : > { %506 = vmatpush.bf16.msra.mxu0 %v2728_v6  ;;  %2853 = vmatpush.bf16.msra.mxu3 %v2728_v6  ;;  %v2738_v6 = vld [vmem:[%s3423_s3 + $0x18] sm:$0xff] }
  0x25   : > { %877 = vmatpush.bf16.msra.mxu2 %v2738_v6 }
  0x28   : > { %507 = vmatpush.bf16.msra.mxu0 %v2727_v7  ;;  %2854 = vmatpush.bf16.msra.mxu3 %v2727_v7  ;;  %v2754_v7 = vld [vmem:[%s3423_s3 + $0x98] sm:$0xff] }
  0x2b   : > { %508 = vmatmul.bf16.vlgmr.msra.gmra.mxu0 %v2715_v8  ;;  %558 = vmatmul.bf16.vlgmr.msra.gmra.mxu3 %v2725_v14  ;;  %v2737_v14 = vld [vmem:[%s3423_s3 + $0x10] sm:$0xff] }
  0x2c   : > { %963 = vmatpush.bf16.msrb.mxu3 %v2758_v51  ;;  %878 = vmatpush.bf16.msra.mxu2 %v2737_v14 }
  0x30   : > { %964 = vmatpush.bf16.msrb.mxu3 %v2757_v55 }
  0x34   : > { %965 = vmatpush.bf16.msrb.mxu3 %v2756_v60 }
  0x38   : > { %966 = vmatpush.bf16.msrb.mxu3 %v2755_v0 }
  0x3b   : > { %513 = vmatmul.bf16.gmra.mxu0 %v2716_v9  ;;  %563 = vmatmul.bf16.gmra.mxu3 %v2726_v16 }
  0x3c   : > { %967 = vmatpush.bf16.msrb.mxu3 %v2754_v7  ;;  %v2774_v7 = vld [vmem:[%s3423_s3 + $0x138] sm:$0xff] }
  0x4b   : > { %518 = vmatmul.bf16.gmra.mxu0 %v2717_v10  ;;  %568 = vmatmul.bf16.gmra.mxu3 %v438_v20  ;;  %v2736_v20 = vld [vmem:[%s3423_s3 + $0x8] sm:$0xff] }
  0x4c   : > { %879 = vmatpush.bf16.msra.mxu2 %v2736_v20 }
  0x5b   : > { %523 = vmatmul.bf16.gmra.mxu0 %v2718_v11 }
  0x6b   : > { %528 = vmatmul.bf16.gmra.mxu0 %v2719_v12 }
  0x7b   : > { %533 = vmatmul.bf16.gmra.mxu0 %v2720_v13  ;;  %v2745_v13 = vld [vmem:[%s3423_s3 + $0x50] sm:$0xff] }
  0x7c   : > { %811 = vmatpush.bf16.msra.mxu1 %v2745_v13 }
  0x80   : > { %812 = vmatpush.bf16.msra.mxu1 %v2744_v19 }
  0x8b   : > { %538 = vmatmul.bf16.gmra.mxu0 %v2721_v15  ;;  %v2753_v15 = vld [vmem:[%s3423_s3 + $0x90] sm:$0xff] }
  0x8c   : > { %968 = vmatpush.bf16.msrb.mxu3 %v2753_v15  ;;  %v2773_v15 = vld [vmem:[%s3423_s3 + $0x130] sm:$0xff] }
  0x9b   : > { %543 = vmatmul.bf16.gmra.mxu0 %v2722_v17 }
  0xa8   : > { %v509_v23 = vpop.f32.mrf.mxu0 }
  0xa9   : > { %v510_v24 = vadd.f32 %v2982_v21, %v509_v23 }
  0xab   : > { %v573_v25 = vmax.f32 %v510_v24, 0.0  ;;  %548 = vmatmul.bf16.gmra.mxu0 %v2723_v22  ;;  %v2752_v22 = vld [vmem:[%s3423_s3 + $0x88] sm:$0xff]  ;;  %v2743_v24 = vld [vmem:[%s3423_s3 + $0x40] sm:$0xff] }
  0xac   : > { %969 = vmatpush.bf16.msrb.mxu3 %v2752_v22  ;;  %813 = vmatpush.bf16.msra.mxu1 %v2743_v24 }
  0xad   : > { %598 = vst [vmem:[#allocation2] sm:$0xff] %v573_v25  ;;  %v2735_v25 = vld [vmem:[%s3423_s3] sm:$0xff] }
  0xae   : > { %880 = vmatpush.bf16.msra.mxu2 %v2735_v25 }
  0xb0   : > { %v511_v26 = vpop.f32.mrf.mxu0 }
  0xb1   : > { %v512_v28 = vadd.f32 %v2982_v21, %v511_v26  ;;  %v2751_v26 = vld [vmem:[%s3423_s3 + $0x80] sm:$0xff] }
  0xb2   : > { %970 = vmatpush.bf16.msrb.mxu3 %v2751_v26  ;;  %1151 = vmatpush.bf16.msrb.mxu2 %v2774_v7 }
  0xb3   : > { %v574_v29 = vmax.f32 %v512_v28, 0.0 }
  0xb5   : > { %599 = vst [vmem:[#allocation2 + $0x8] sm:$0xff] %v574_v29 }
  0xb6   : > { %1152 = vmatpush.bf16.msrb.mxu2 %v2773_v15 }
  0xb8   : > { %v514_v31 = vpop.f32.mrf.mxu0 }
  0xb9   : > { %v515_v32 = vadd.f32 %v2982_v21, %v514_v31 }
  0xbb   : > { %v575_v33 = vmax.f32 %v515_v32, 0.0  ;;  %553 = vmatmul.bf16.gmra.mxu0 %v2724_v30 }
  0xbc   : > { %v630_v39 = vld [vmem:[#allocation2] ss:$2 sm:$0x7f]  ;;  %v632_v40 = vld [vmem:[#allocation2 + $0x1] ss:$2 sm:$0x7f] }
  0xbd   : > { %600 = vst [vmem:[#allocation2 + $0x10] sm:$0xff] %v575_v33  ;;  %v637_v44 = vmax.f32 %v630_v39, %v632_v40 }
  0xc0   : > { %v516_v34 = vpop.f32.mrf.mxu0 }
  0xc1   : > { %v517_v35 = vadd.f32 %v2982_v21, %v516_v34 }
  0xc3   : > { %v576_v36 = vmax.f32 %v517_v35, 0.0  ;;  %v559_v35 = vpop.f32.mrf.mxu3 }
  0xc5   : > { %601 = vst [vmem:[#allocation2 + $0x18] sm:$0xff] %v576_v36 }
  0xc8   : > { %v519_v37 = vpop.f32.mrf.mxu0 }
  0xc9   : > { %v520_v38 = vadd.f32 %v2982_v21, %v519_v37 }
  0xcb   : > { %v577_v41 = vmax.f32 %v520_v38, 0.0 }
  0xcc   : > { %v634_v42 = vld [vmem:[#allocation2 + $0xe] ss:$2 sm:$0x7f]  ;;  %v636_v43 = vld [vmem:[#allocation2 + $0xf] ss:$2 sm:$0x7f] }
  0xcd   : > { %v638_v45 = vmax.f32 %v634_v42, %v636_v43  ;;  %602 = vst [vmem:[#allocation2 + $0x20] sm:$0xff] %v577_v41 }
  0xcf   : > { %v639_v46 = vmax.f32 %v637_v44, %v638_v45 }
  0xd0   : > { %v521_v47 = vpop.f32.mrf.mxu0 }
  0xd1   : > { %v522_v48 = vadd.f32 %v2982_v21, %v521_v47  ;;  %640 = vst [vmem:[#allocation4] sm:$0x7f] %v639_v46  ;;  %v561_v46 = vpop.f32.mrf.mxu3 }
  0xd2   : > { %v562_v49 = vadd.f32 %v2982_v21, %v561_v46 }
  0xd3   : > { %v578_v52 = vmax.f32 %v522_v48, 0.0  ;;  %v560_v48 = vadd.f32 %v2982_v21, %v559_v35 }
  0xd4   : > { %v594_v54 = vmax.f32 %v562_v49, 0.0  ;;  %v2769_v49 = vld [vmem:[%s3423_s3 + $0x110] sm:$0xff] }
  0xd5   : > { %603 = vst [vmem:[#allocation2 + $0x28] sm:$0xff] %v578_v52  ;;  %v593_v53 = vmax.f32 %v560_v48, 0.0 }
  0xd6   : > { %619 = vst [vmem:[#allocation2 + $0xa8] sm:$0xff] %v594_v54  ;;  %v2768_v54 = vld [vmem:[%s3423_s3 + $0x108] sm:$0xff] }
  0xd7   : > { %618 = vst [vmem:[#allocation2 + $0xa0] sm:$0xff] %v593_v53 }
  0xd8   : > { %v524_v56 = vpop.f32.mrf.mxu0 }
  0xd9   : > { %v525_v57 = vadd.f32 %v2982_v21, %v524_v56  ;;  %v564_v63 = vpop.f32.mrf.mxu3 }
  0xda   : > { %v565_v20 = vadd.f32 %v2982_v21, %v564_v63 }
  0xdb   : > { %v579_v61 = vmax.f32 %v525_v57, 0.0 }
  0xdc   : > { %v642_v2 = vld [vmem:[#allocation2 + $0x1c] ss:$2 sm:$0x7f]  ;;  %v644_v3 = vld [vmem:[#allocation2 + $0x1d] ss:$2 sm:$0x7f] }
  0xdd   : > { %604 = vst [vmem:[#allocation2 + $0x30] sm:$0xff] %v579_v61  ;;  %v649_v11 = vmax.f32 %v642_v2, %v644_v3  ;;  %v595_v26 = vmax.f32 %v565_v20, 0.0 }
  0xdf   : > { %620 = vst [vmem:[#allocation2 + $0xb0] sm:$0xff] %v595_v26 }
  0xe0   : > { %v526_v1 = vpop.f32.mrf.mxu0 }
  0xe1   : > { %v527_v4 = vadd.f32 %v2982_v21, %v526_v1  ;;  %v566_v3 = vpop.f32.mrf.mxu3 }
  0xe2   : > { %v567_v22 = vadd.f32 %v2982_v21, %v566_v3 }
  0xe3   : > { %v580_v8 = vmax.f32 %v527_v4, 0.0 }
  0xe4   : > { %v646_v9 = vld [vmem:[#allocation2 + $0x2a] ss:$2 sm:$0x7f]  ;;  %v648_v10 = vld [vmem:[#allocation2 + $0x2b] ss:$2 sm:$0x7f] }
  0xe5   : > { %v650_v12 = vmax.f32 %v646_v9, %v648_v10  ;;  %605 = vst [vmem:[#allocation2 + $0x38] sm:$0xff] %v580_v8  ;;  %v2766_v8 = vld [vmem:[%s3423_s3 + $0xf8] sm:$0xff] }
  0xe6   : > { %v2782_v9 = vld [vmem:[%s3423_s3 + $0x178] sm:$0xff]  ;;  %1057 = vmatpush.bf16.msrb.mxu1 %v2766_v8 }
  0xe7   : > { %v651_v16 = vmax.f32 %v649_v11, %v650_v12  ;;  %1245 = vmatpush.bf16.msra.mxu3 %v2782_v9 }
  0xe8   : > { %v529_v17 = vpop.f32.mrf.mxu0 }
  0xe9   : > { %v530_v18 = vadd.f32 %v2982_v21, %v529_v17  ;;  %652 = vst [vmem:[#allocation4 + $0x7] sm:$0x7f] %v651_v16  ;;  %v2765_v16 = vld [vmem:[%s3423_s3 + $0xf0] sm:$0xff] }
  0xea   : > { %v2781_v17 = vld [vmem:[%s3423_s3 + $0x170] sm:$0xff]  ;;  %1058 = vmatpush.bf16.msrb.mxu1 %v2765_v16 }
  0xeb   : > { %v581_v23 = vmax.f32 %v530_v18, 0.0  ;;  %1246 = vmatpush.bf16.msra.mxu3 %v2781_v17  ;;  %v2796_v17 = vld [vmem:[%s3423_s3 + $0x1e8] sm:$0xff] }
  0xed   : > { %606 = vst [vmem:[#allocation2 + $0x40] sm:$0xff] %v581_v23  ;;  %v569_v23 = vpop.f32.mrf.mxu3 }
  0xee   : > { %v570_v24 = vadd.f32 %v2982_v21, %v569_v23  ;;  %v2803_v23 = vld [vmem:[%s3423_s3 + $0x220] sm:$0xff] }
  0xf0   : > { %v531_v27 = vpop.f32.mrf.mxu0  ;;  %v735_v50 = vld [vmem:[#allocation4 + $0x1] sm:$0xff] }
  0xf1   : > { %v532_v28 = vadd.f32 %v2982_v21, %v531_v27  ;;  %v713_v51 = vld [vmem:[#allocation4] sm:$0xff]  ;;  %v596_v27 = vmax.f32 %v567_v22, 0.0  ;;  %v2787_v22 = vld [vmem:[%s3423_s3 + $0x1a0] sm:$0xff] }
  0xf2   : > { %v892_v52 = vld [vmem:[#allocation4 + $0x2] sm:$0xff] }
  0xf3   : > { %v582_v29 = vmax.f32 %v532_v28, 0.0  ;;  %v2772_v28 = vld [vmem:[%s3423_s3 + $0x128] sm:$0xff]  ;;  %621 = vst [vmem:[#allocation2 + $0xb8] sm:$0xff] %v596_v27 }
  0xf4   : > { %v654_v36 = vld [vmem:[#allocation2 + $0x38] ss:$2 sm:$0x7f]  ;;  %v656_v37 = vld [vmem:[#allocation2 + $0x39] ss:$2 sm:$0x7f]  ;;  %1153 = vmatpush.bf16.msrb.mxu2 %v2772_v28 }
  0xf5   : > { %607 = vst [vmem:[#allocation2 + $0x48] sm:$0xff] %v582_v29  ;;  %v661_v41 = vmax.f32 %v654_v36, %v656_v37  ;;  %v2764_v29 = vld [vmem:[%s3423_s3 + $0xe8] sm:$0xff]  ;;  %v571_v37 = vpop.f32.mrf.mxu3 }
  0xf6   : > { %1059 = vmatpush.bf16.msrb.mxu1 %v2764_v29 }
  0xf8   : > { %v534_v30 = vpop.f32.mrf.mxu0 }
  0xf9   : > { %v535_v31 = vadd.f32 %v2982_v21, %v534_v30  ;;  %v2780_v30 = vld [vmem:[%s3423_s3 + $0x168] sm:$0xff] }
  0xfa   : > { %1247 = vmatpush.bf16.msra.mxu3 %v2780_v30 }
  0xfb   : > { %v583_v32 = vmax.f32 %v535_v31, 0.0  ;;  %v597_v31 = vmax.f32 %v570_v24, 0.0 }
  0xfd   : > { %608 = vst [vmem:[#allocation2 + $0x50] sm:$0xff] %v583_v32  ;;  %v2771_v32 = vld [vmem:[%s3423_s3 + $0x120] sm:$0xff] }
  0xfe   : > { %622 = vst [vmem:[#allocation2 + $0xc0] sm:$0xff] %v597_v31  ;;  %1154 = vmatpush.bf16.msrb.mxu2 %v2771_v32 }
 0x100   : > { %v536_v33 = vpop.f32.mrf.mxu0 }
 0x101   : > { %v537_v34 = vadd.f32 %v2982_v21, %v536_v33  ;;  %v2763_v33 = vld [vmem:[%s3423_s3 + $0xe0] sm:$0xff] }
 0x102   : > { %1060 = vmatpush.bf16.msrb.mxu1 %v2763_v33  ;;  %v2794_v33 = vld [vmem:[%s3423_s3 + $0x1d8] sm:$0xff] }
 0x103   : > { %v584_v38 = vmax.f32 %v537_v34, 0.0  ;;  %v2779_v34 = vld [vmem:[%s3423_s3 + $0x160] sm:$0xff] }
 0x104   : > { %v658_v39 = vld [vmem:[#allocation2 + $0x46] ss:$2 sm:$0x7f]  ;;  %v660_v40 = vld [vmem:[#allocation2 + $0x47] ss:$2 sm:$0x7f]  ;;  %1248 = vmatpush.bf16.msra.mxu3 %v2779_v34 }
 0x105   : > { %v662_v42 = vmax.f32 %v658_v39, %v660_v40  ;;  %609 = vst [vmem:[#allocation2 + $0x58] sm:$0xff] %v584_v38  ;;  %v2770_v39 = vld [vmem:[%s3423_s3 + $0x118] sm:$0xff] }
 0x106   : > { %v2762_v40 = vld [vmem:[%s3423_s3 + $0xd8] sm:$0xff]  ;;  %1155 = vmatpush.bf16.msrb.mxu2 %v2770_v39 }
 0x107   : > { %v663_v43 = vmax.f32 %v661_v41, %v662_v42  ;;  %v2778_v41 = vld [vmem:[%s3423_s3 + $0x158] sm:$0xff]  ;;  %v702_v42 = vld [vmem:[#allocation2 + $0xa8] ss:$2 sm:$0x7f]  ;;  %1061 = vmatpush.bf16.msrb.mxu1 %v2762_v40 }
 0x108   : > { %v539_v44 = vpop.f32.mrf.mxu0  ;;  %1249 = vmatpush.bf16.msra.mxu3 %v2778_v41  ;;  %v708_v46 = vld [vmem:[#allocation2 + $0xb7] ss:$2 sm:$0x7f] }
 0x109   : > { %v540_v45 = vadd.f32 %v2982_v21, %v539_v44  ;;  %664 = vst [vmem:[#allocation4 + $0xe] sm:$0x7f] %v663_v43  ;;  %v704_v43 = vld [vmem:[#allocation2 + $0xa9] ss:$2 sm:$0x7f]  ;;  %v2786_v34 = vld [vmem:[%s3423_s3 + $0x198] sm:$0xff] }
 0x10a   : > { %v709_v44 = vmax.f32 %v702_v42, %v704_v43  ;;  %1156 = vmatpush.bf16.msrb.mxu2 %v2769_v49  ;;  %v2793_v42 = vld [vmem:[%s3423_s3 + $0x1d0] sm:$0xff]  ;;  %v2791_v49 = vld [vmem:[%s3423_s3 + $0x1c0] sm:$0xff] }
 0x10b   : > { %v585_v47 = vmax.f32 %v540_v45, 0.0  ;;  %v706_v45 = vld [vmem:[#allocation2 + $0xb6] ss:$2 sm:$0x7f] }
 0x10c   : > { %v710_v48 = vmax.f32 %v706_v45, %v708_v46  ;;  %v2785_v43 = vld [vmem:[%s3423_s3 + $0x190] sm:$0xff]  ;;  %v2792_v46 = vld [vmem:[%s3423_s3 + $0x1c8] sm:$0xff] }
 0x10d   : > { %610 = vst [vmem:[#allocation2 + $0x60] sm:$0xff] %v585_v47 }
 0x10e   : > { %v711_v53 = vmax.f32 %v709_v44, %v710_v48  ;;  %1157 = vmatpush.bf16.msrb.mxu2 %v2768_v54  ;;  %v2801_v44 = vld [vmem:[%s3423_s3 + $0x210] sm:$0xff]  ;;  %v2800_v48 = vld [vmem:[%s3423_s3 + $0x208] sm:$0xff] }
 0x110   : > { %v541_v55 = vpop.f32.mrf.mxu0  ;;  %v3073_v56 = vld [vmem:[#allocation4 + $0x9] sm:$0xff]  ;;  %712 = vst [vmem:[#allocation4 + $0x2a] sm:$0x7f] %v711_v53 }
 0x111   : > { %v3075_v57 = vld [vmem:[#allocation4 + $0x8] sm:$0xff]  ;;  %v542_v59 = vadd.f32 %v2982_v21, %v541_v55  ;;  %v739_v60 = vpack.c.bf16 %v3073_v56, %v735_v50  ;;  %v2760_v55 = vld [vmem:[%s3423_s3 + $0xc8] sm:$0xff] }
 0x112   : > { %v893_v58 = vld [vmem:[#allocation4 + $0xa] sm:$0xff]  ;;  %v717_v61 = vpack.c.bf16 %v3075_v57, %v713_v51 }
 0x113   : > { %v896_v62 = vpack.c.bf16 %v893_v58, %v892_v52  ;;  %v586_v0 = vmax.f32 %v542_v59, 0.0  ;;  %814 = vmatmul.bf16.vlgmr.msra.gmra.mxu1 %v739_v60  ;;  %v2761_v50 = vld [vmem:[%s3423_s3 + $0xd0] sm:$0xff]  ;;  %v2776_v59 = vld [vmem:[%s3423_s3 + $0x148] sm:$0xff]  ;;  %v2767_v60 = vld [vmem:[%s3423_s3 + $0x100] sm:$0xff] }
 0x114   : > { %881 = vmatmul.bf16.vlgmr.msra.gmra.mxu2 %v717_v61  ;;  %v666_v4 = vld [vmem:[#allocation2 + $0x54] ss:$2 sm:$0x7f]  ;;  %v668_v5 = vld [vmem:[#allocation2 + $0x55] ss:$2 sm:$0x7f]  ;;  %1062 = vmatpush.bf16.msrb.mxu1 %v2761_v50 }
 0x115   : > { %971 = vmatmul.bf16.vlgmr.msrb.gmra.mxu3 %v896_v62  ;;  %611 = vst [vmem:[#allocation2 + $0x68] sm:$0xff] %v586_v0  ;;  %v673_v12 = vmax.f32 %v666_v4, %v668_v5  ;;  %v2777_v51 = vld [vmem:[%s3423_s3 + $0x150] sm:$0xff]  ;;  %v2759_v61 = vld [vmem:[%s3423_s3 + $0xc0] sm:$0xff]  ;;  %1158 = vmatpush.bf16.msrb.mxu2 %v2767_v60  ;;  %v2798_v4 = vld [vmem:[%s3423_s3 + $0x1f8] sm:$0xff] }
 0x116   : > { %1250 = vmatpush.bf16.msra.mxu3 %v2777_v51  ;;  %v2775_v62 = vld [vmem:[%s3423_s3 + $0x140] sm:$0xff]  ;;  %v2790_v5 = vld [vmem:[%s3423_s3 + $0x1b8] sm:$0xff]  ;;  %v986_v53 = vld [vmem:[#allocation4 + $0x7] sm:$0xff] }
 0x117   : > { %v2783_v50 = vld [vmem:[%s3423_s3 + $0x180] sm:$0xff] }
 0x118   : > { %v544_v1 = vpop.f32.mrf.mxu0  ;;  %1063 = vmatpush.bf16.msrb.mxu1 %v2760_v55 }
 0x119   : > { %v545_v2 = vadd.f32 %v2982_v21, %v544_v1  ;;  %1433 = vmatpush.bf16.msra.mxu2 %v2798_v4 }
 0x11a   : > { %1251 = vmatpush.bf16.msra.mxu3 %v2776_v59 }
 0x11b   : > { %v587_v6 = vmax.f32 %v545_v2, 0.0 }
 0x11c   : > { %v670_v10 = vld [vmem:[#allocation2 + $0x62] ss:$2 sm:$0x7f]  ;;  %v672_v11 = vld [vmem:[#allocation2 + $0x63] ss:$2 sm:$0x7f]  ;;  %1064 = vmatpush.bf16.msrb.mxu1 %v2759_v61 }
 0x11d   : > { %v674_v13 = vmax.f32 %v670_v10, %v672_v11  ;;  %612 = vst [vmem:[#allocation2 + $0x70] sm:$0xff] %v587_v6  ;;  %v2806_v6 = vld [vmem:[%s3423_s3 + $0x238] sm:$0xff]  ;;  %v2797_v11 = vld [vmem:[%s3423_s3 + $0x1f0] sm:$0xff] }
 0x11e   : > { %1252 = vmatpush.bf16.msra.mxu3 %v2775_v62  ;;  %1434 = vmatpush.bf16.msra.mxu2 %v2797_v11 }
 0x11f   : > { %v675_v14 = vmax.f32 %v673_v12, %v674_v13  ;;  %v2789_v12 = vld [vmem:[%s3423_s3 + $0x1b0] sm:$0xff] }
 0x120   : > { %v546_v18 = vpop.f32.mrf.mxu0  ;;  %1339 = vmatpush.bf16.msra.mxu1 %v2790_v5  ;;  %v2805_v13 = vld [vmem:[%s3423_s3 + $0x230] sm:$0xff] }
 0x121   : > { %676 = vst [vmem:[#allocation4 + $0x15] sm:$0x7f] %v675_v14  ;;  %v547_v19 = vadd.f32 %v2982_v21, %v546_v18  ;;  %v2788_v18 = vld [vmem:[%s3423_s3 + $0x1a8] sm:$0xff] }
 0x122   : > { %1527 = vmatpush.bf16.msrb.mxu3 %v2806_v6  ;;  %1435 = vmatpush.bf16.msra.mxu2 %v2796_v17 }
 0x123   : > { %v588_v25 = vmax.f32 %v547_v19, 0.0  ;;  %v2804_v19 = vld [vmem:[%s3423_s3 + $0x228] sm:$0xff] }
 0x124   : > { %1340 = vmatpush.bf16.msra.mxu1 %v2789_v12 }
 0x125   : > { %613 = vst [vmem:[#allocation2 + $0x78] sm:$0xff] %v588_v25 }
 0x126   : > { %1528 = vmatpush.bf16.msrb.mxu3 %v2805_v13 }
 0x128   : > { %v549_v35 = vpop.f32.mrf.mxu0  ;;  %1341 = vmatpush.bf16.msra.mxu1 %v2788_v18  ;;  %v737_v24 = vld [vmem:[#allocation4 + $0x11] sm:$0xff] }
 0x129   : > { %v550_v36 = vadd.f32 %v2982_v21, %v549_v35  ;;  %v715_v25 = vld [vmem:[#allocation4 + $0x10] sm:$0xff] }
 0x12a   : > { %1529 = vmatpush.bf16.msrb.mxu3 %v2804_v19  ;;  %v894_v26 = vld [vmem:[#allocation4 + $0x12] sm:$0xff]  ;;  %v1084_v55 = vpack.c.bf16 %v715_v25, %v3075_v57 }
 0x12b   : > { %v589_v38 = vmax.f32 %v550_v36, 0.0  ;;  %v2802_v35 = vld [vmem:[%s3423_s3 + $0x218] sm:$0xff] }
 0x12c   : > { %v678_v1 = vld [vmem:[#allocation2 + $0x70] ss:$2 sm:$0x7f]  ;;  %v680_v2 = vld [vmem:[#allocation2 + $0x71] ss:$2 sm:$0x7f]  ;;  %1342 = vmatpush.bf16.msra.mxu1 %v2787_v22 }
 0x12d   : > { %614 = vst [vmem:[#allocation2 + $0x80] sm:$0xff] %v589_v38  ;;  %v685_v9 = vmax.f32 %v678_v1, %v680_v2  ;;  %v987_v51 = vld [vmem:[#allocation4 + $0xf] sm:$0xff] }
 0x12e   : > { %1530 = vmatpush.bf16.msrb.mxu3 %v2803_v23  ;;  %v990_v54 = vpack.c.bf16 %v987_v51, %v986_v53  ;;  %v1268_v57 = vld [vmem:[#allocation4 + $0xe] sm:$0xff] }
 0x130   : > { %v551_v47 = vpop.f32.mrf.mxu0  ;;  %1343 = vmatpush.bf16.msra.mxu1 %v2786_v34 }
 0x131   : > { %v552_v52 = vadd.f32 %v2982_v21, %v551_v47  ;;  %v2784_v47 = vld [vmem:[%s3423_s3 + $0x188] sm:$0xff] }
 0x132   : > { %1531 = vmatpush.bf16.msrb.mxu3 %v2802_v35  ;;  %v2821_v35 = vld [vmem:[%s3425_s5 + $0x70] sm:$0xff] }
 0x133   : > { %v590_v58 = vmax.f32 %v552_v52, 0.0  ;;  %v2799_v52 = vld [vmem:[%s3423_s3 + $0x200] sm:$0xff] }
 0x134   : > { %1344 = vmatpush.bf16.msra.mxu1 %v2785_v43  ;;  %v2819_v43 = vld [vmem:[%s3425_s5 + $0x60] sm:$0xff] }
 0x135   : > { %615 = vst [vmem:[#allocation2 + $0x88] sm:$0xff] %v590_v58  ;;  %v1178_v58 = vpack.c.bf16 %v737_v24, %v3073_v56 }
 0x136   : > { %1532 = vmatpush.bf16.msrb.mxu3 %v2801_v44 }
 0x138   : > { %v554_v63 = vpop.f32.mrf.mxu0  ;;  %1345 = vmatpush.bf16.msra.mxu1 %v2784_v47 }
 0x139   : > { %v555_v0 = vadd.f32 %v2982_v21, %v554_v63 }
 0x13a   : > { %1533 = vmatpush.bf16.msrb.mxu3 %v2800_v48  ;;  %v2818_v48 = vld [vmem:[%s3425_s5 + $0x58] sm:$0xff] }
 0x13b   : > { %v591_v3 = vmax.f32 %v555_v0, 0.0 }
 0x13c   : > { %v682_v7 = vld [vmem:[#allocation2 + $0x7e] ss:$2 sm:$0x7f]  ;;  %v684_v8 = vld [vmem:[#allocation2 + $0x7f] ss:$2 sm:$0x7f]  ;;  %1346 = vmatpush.bf16.msra.mxu1 %v2783_v50 }
 0x13d   : > { %v686_v10 = vmax.f32 %v682_v7, %v684_v8  ;;  %616 = vst [vmem:[#allocation2 + $0x90] sm:$0xff] %v591_v3 }
 0x13e   : > { %1534 = vmatpush.bf16.msrb.mxu3 %v2799_v52 }
 0x13f   : > { %v687_v14 = vmax.f32 %v685_v9, %v686_v10 }
 0x140   : > { %v556_v15 = vpop.f32.mrf.mxu0 }
 0x141   : > { %688 = vst [vmem:[#allocation4 + $0x1c] sm:$0x7f] %v687_v14  ;;  %v557_v16 = vadd.f32 %v2982_v21, %v556_v15  ;;  %v2795_v21 = vld [vmem:[%s3423_s3 + $0x1e0] sm:$0xff] }
 0x142   : > { %1436 = vmatpush.bf16.msra.mxu2 %v2795_v21  ;;  %v2814_v21 = vld [vmem:[%s3425_s5 + $0x38] sm:$0xff] }
 0x143   : > { %v592_v20 = vmax.f32 %v557_v16, 0.0 }
 0x145   : > { %617 = vst [vmem:[#allocation2 + $0x98] sm:$0xff] %v592_v20 }
 0x146   : > { %1437 = vmatpush.bf16.msra.mxu2 %v2794_v33  ;;  %v2810_v33 = vld [vmem:[%s3425_s5 + $0x18] sm:$0xff] }
 0x148   : > { %v738_v27 = vld [vmem:[#allocation4 + $0x19] sm:$0xff] }
 0x149   : > { %v716_v28 = vld [vmem:[#allocation4 + $0x18] sm:$0xff]  ;;  %v740_v30 = vpack.c.bf16 %v738_v27, %v737_v24 }
 0x14a   : > { %v895_v29 = vld [vmem:[#allocation4 + $0x1a] sm:$0xff]  ;;  %v3197_v31 = vpack.c.bf16 %v716_v28, %v715_v25  ;;  %1438 = vmatpush.bf16.msra.mxu2 %v2793_v42  ;;  %v2813_v25 = vld [vmem:[%s3425_s5 + $0x30] sm:$0xff] }
 0x14b   : > { %v897_v32 = vpack.c.bf16 %v895_v29, %v894_v26  ;;  %819 = vmatmul.bf16.gmra.mxu1 %v740_v30  ;;  %v988_v62 = vld [vmem:[#allocation4 + $0x17] sm:$0xff]  ;;  %v2812_v26 = vld [vmem:[%s3425_s5 + $0x28] sm:$0xff] }
 0x14c   : > { %886 = vmatmul.bf16.gmra.mxu2 %v3197_v31  ;;  %v690_v36 = vld [vmem:[#allocation2 + $0x8c] ss:$2 sm:$0x7f]  ;;  %v692_v37 = vld [vmem:[#allocation2 + $0x8d] ss:$2 sm:$0x7f]  ;;  %v1366_v4 = vpack.c.bf16 %v988_v62, %v987_v51 }
 0x14d   : > { %976 = vmatmul.bf16.gmra.mxu3 %v897_v32  ;;  %v694_v38 = vld [vmem:[#allocation2 + $0x9a] ss:$2 sm:$0x7f]  ;;  %v696_v39 = vld [vmem:[#allocation2 + $0x9b] ss:$2 sm:$0x7f]  ;;  %v697_v40 = vmax.f32 %v690_v36, %v692_v37 }
 0x14e   : > { %v698_v41 = vmax.f32 %v694_v38, %v696_v39  ;;  %1439 = vmatpush.bf16.msra.mxu2 %v2792_v46  ;;  %v1269_v2 = vld [vmem:[#allocation4 + $0x16] sm:$0xff]  ;;  %v2809_v37 = vld [vmem:[%s3425_s5 + $0x10] sm:$0xff]  ;;  %v2820_v38 = vld [vmem:[%s3425_s5 + $0x68] sm:$0xff] }
 0x14f   : > { %v1272_v3 = vpack.c.bf16 %v1269_v2, %v1268_v57  ;;  %v2811_v30 = vld [vmem:[%s3425_s5 + $0x20] sm:$0xff]  ;;  %v2829_v51 = vld [vmem:[%s3425_s5 + $0xb0] sm:$0xff] }
 0x150   : > { %v699_v45 = vmax.f32 %v697_v40, %v698_v41  ;;  %v2808_v40 = vld [vmem:[%s3425_s5 + $0x8] sm:$0xff]  ;;  %v2807_v46 = vld [vmem:[%s3425_s5] sm:$0xff] }
 0x152   : > { %700 = vst [vmem:[#allocation4 + $0x23] sm:$0x7f] %v699_v45  ;;  %1440 = vmatpush.bf16.msra.mxu2 %v2791_v49  ;;  %v2830_v45 = vld [vmem:[%s3425_s5 + $0xb8] sm:$0xff] }
 0x153   : > { %v2838_v49 = vld [vmem:[%s3425_s5 + $0xf8] sm:$0xff] }
 0x159   : > { %v989_v59 = vld [vmem:[#allocation4 + $0x1f] sm:$0xff]  ;;  %v1365_v6 = vld [vmem:[#allocation4 + $0x27] sm:$0xff] }
 0x15a   : > { %v1083_v60 = vld [vmem:[#allocation4 + $0x20] sm:$0xff]  ;;  %v991_v63 = vpack.c.bf16 %v989_v59, %v988_v62  ;;  %v1459_v7 = vld [vmem:[#allocation4 + $0x28] sm:$0xff]  ;;  %v1367_v9 = vpack.c.bf16 %v1365_v6, %v989_v59 }
 0x15b   : > { %1065 = vmatmul.bf16.vlgmr.msrb.gmra.mxu1 %v990_v54  ;;  %v1177_v61 = vld [vmem:[#allocation4 + $0x21] sm:$0xff]  ;;  %v1085_v0 = vpack.c.bf16 %v1083_v60, %v716_v28  ;;  %v1461_v10 = vpack.c.bf16 %v1459_v7, %v1083_v60 }
 0x15c   : > { %1159 = vmatmul.bf16.vlgmr.msrb.gmra.mxu2 %v1084_v55  ;;  %v1179_v1 = vpack.c.bf16 %v1177_v61, %v738_v27  ;;  %v1270_v56 = vld [vmem:[#allocation4 + $0x1e] sm:$0xff]  ;;  %v1271_v5 = vld [vmem:[#allocation4 + $0x26] sm:$0xff]  ;;  %1861 = vmatpush.bf16.msrb.mxu1 %v2814_v21 }
 0x15d   : > { %1253 = vmatmul.bf16.vlgmr.msra.gmra.mxu3 %v1178_v58  ;;  %v1273_v8 = vpack.c.bf16 %v1271_v5, %v1270_v56  ;;  %v2817_v58 = vld [vmem:[%s3425_s5 + $0x50] sm:$0xff]  ;;  %v2828_v61 = vld [vmem:[%s3425_s5 + $0xa8] sm:$0xff]  ;;  %v3334_v56 = vld [vmem:[%s3424_s4] ss:$0 sm:$0xff] }
 0x15e   : > { %1887 = vmatpush.bf16.msra.mxu3 %v2830_v45  ;;  %v2837_v59 = vld [vmem:[%s3425_s5 + $0xf0] sm:$0xff] }
 0x160   : > { %1862 = vmatpush.bf16.msrb.mxu1 %v2813_v25 }
 0x162   : > { %1888 = vmatpush.bf16.msra.mxu3 %v2829_v51 }
 0x164   : > { %1863 = vmatpush.bf16.msrb.mxu1 %v2812_v26  ;;  %v2833_v26 = vld [vmem:[%s3425_s5 + $0xd0] sm:$0xff] }
 0x166   : > { %1889 = vmatpush.bf16.msra.mxu3 %v2828_v61 }
 0x168   : > { %1864 = vmatpush.bf16.msrb.mxu1 %v2811_v30 }
 0x16b   : > { %1070 = vmatmul.bf16.gmra.mxu1 %v991_v63 }
 0x16c   : > { %1164 = vmatmul.bf16.gmra.mxu2 %v1085_v0  ;;  %1865 = vmatpush.bf16.msrb.mxu1 %v2810_v33  ;;  %v2816_v0 = vld [vmem:[%s3425_s5 + $0x48] sm:$0xff] }
 0x16d   : > { %1258 = vmatmul.bf16.gmra.mxu3 %v1179_v1  ;;  %v2836_v1 = vld [vmem:[%s3425_s5 + $0xe8] sm:$0xff] }
 0x170   : > { %1866 = vmatpush.bf16.msrb.mxu1 %v2809_v37 }
 0x174   : > { %1867 = vmatpush.bf16.msrb.mxu1 %v2808_v40  ;;  %v2831_v40 = vld [vmem:[%s3425_s5 + $0xc0] sm:$0xff] }
 0x178   : > { %1868 = vmatpush.bf16.msrb.mxu1 %v2807_v46 }
 0x17b   : > { %1347 = vmatmul.bf16.vlgmr.msra.gmra.mxu1 %v1272_v3  ;;  %v2827_v3 = vld [vmem:[%s3425_s5 + $0xa0] sm:$0xff] }
 0x17c   : > { %1441 = vmatmul.bf16.vlgmr.msra.gmra.mxu2 %v1366_v4  ;;  %1900 = vmatpush.bf16.msra.mxu1 %v2838_v49 }
 0x17d   : > { %1535 = vmatmul.bf16.vlgmr.msrb.gmra.mxu3 %v3197_v31  ;;  %v2822_v31 = vld [vmem:[%s3425_s5 + $0x78] sm:$0xff] }
 0x17e   : > { %1874 = vmatpush.bf16.msrb.mxu2 %v2822_v31  ;;  %1890 = vmatpush.bf16.msra.mxu3 %v2827_v3  ;;  %v2824_v31 = vld [vmem:[%s3425_s5 + $0x88] sm:$0xff] }
 0x180   : > { %1901 = vmatpush.bf16.msra.mxu1 %v2837_v59 }
 0x182   : > { %1875 = vmatpush.bf16.msrb.mxu2 %v2821_v35 }
 0x184   : > { %1902 = vmatpush.bf16.msra.mxu1 %v2836_v1 }
 0x186   : > { %1876 = vmatpush.bf16.msrb.mxu2 %v2820_v38 }
 0x18a   : > { %1877 = vmatpush.bf16.msrb.mxu2 %v2819_v43 }
 0x18b   : > { %1352 = vmatmul.bf16.gmra.mxu1 %v1273_v8 }
 0x18c   : > { %1446 = vmatmul.bf16.gmra.mxu2 %v1367_v9  ;;  %v2815_v9 = vld [vmem:[%s3425_s5 + $0x40] sm:$0xff] }
 0x18d   : > { %1540 = vmatmul.bf16.gmra.mxu3 %v1461_v10  ;;  %v2835_v10 = vld [vmem:[%s3425_s5 + $0xe0] sm:$0xff] }
 0x18e   : > { %1878 = vmatpush.bf16.msrb.mxu2 %v2818_v48  ;;  %1903 = vmatpush.bf16.msra.mxu1 %v2835_v10 }
 0x190   : > { %v815_v11 = vpop.f32.mrf.mxu1 }
 0x192   : > { %1879 = vmatpush.bf16.msrb.mxu2 %v2817_v58 }
 0x196   : > { %1880 = vmatpush.bf16.msrb.mxu2 %v2816_v0 }
 0x197   : > { %v882_v12 = vpop.f32.mrf.mxu2 }
 0x198   : > { %v972_v13 = vpop.f32.mrf.mxu3  ;;  %v817_v14 = vpop.f32.mrf.mxu1  ;;  %v883_v41 = vadd.f32 %v882_v12, %v815_v11  ;;  %v2826_v11 = vld [vmem:[%s3425_s5 + $0x98] sm:$0xff] }
 0x199   : > { %1891 = vmatpush.bf16.msra.mxu3 %v2826_v11 }
 0x19a   : > { %v982_v47 = vadd.f32 %v972_v13, %v883_v41  ;;  %1881 = vmatpush.bf16.msrb.mxu2 %v2815_v9 }
 0x19f   : > { %v884_v15 = vpop.f32.mrf.mxu2 }
 0x1a0   : > { %v974_v16 = vpop.f32.mrf.mxu3  ;;  %v885_v53 = vadd.f32 %v884_v15, %v817_v14  ;;  %v2834_v14 = vld [vmem:[%s3425_s5 + $0xd8] sm:$0xff] }
 0x1a1   : > { %1904 = vmatpush.bf16.msra.mxu1 %v2834_v14 }
 0x1a2   : > { %v983_v62 = vadd.f32 %v974_v16, %v885_v53 }
 0x1a5   : > { %1905 = vmatpush.bf16.msra.mxu1 %v2833_v26  ;;  %v2840_v26 = vld [vmem:[%s3427_s7 + $0x8] sm:$0xff] }
 0x1c8   : > { %v3239_v17 = vpop.f32.mrf.mxu1 }
 0x1cf   : > { %v3241_v18 = vpop.f32.mrf.mxu2 }
 0x1d0   : > { %v3243_v19 = vpop.f32.mrf.mxu3  ;;  %v3245_v20 = vpop.f32.mrf.mxu1  ;;  %v888_v5 = vadd.f32 %v3241_v18, %v3239_v17  ;;  %v2825_v18 = vld [vmem:[%s3425_s5 + $0x90] sm:$0xff] }
 0x1d1   : > { %1892 = vmatpush.bf16.msra.mxu3 %v2825_v18  ;;  %v2844_v18 = vld [vmem:[%s3427_s7 + $0x28] sm:$0xff] }
 0x1d2   : > { %v984_v15 = vadd.f32 %v3243_v19, %v888_v5 }
 0x1d5   : > { %1893 = vmatpush.bf16.msra.mxu3 %v2824_v31 }
 0x1d7   : > { %v3250_v22 = vpop.f32.mrf.mxu2 }
 0x1d8   : > { %v3252_v23 = vpop.f32.mrf.mxu3  ;;  %v1066_v24 = vpop.f32.mrf.mxu1  ;;  %v890_v19 = vadd.f32 %v3250_v22, %v3245_v20 }
 0x1d9   : > { %v1076_v50 = vadd.f32 %v1066_v24, %v982_v47 }
 0x1da   : > { %v985_v35 = vadd.f32 %v3252_v23, %v890_v19 }
 0x1df   : > { %v1160_v27 = vpop.f32.mrf.mxu2 }
 0x1e0   : > { %v1254_v28 = vpop.f32.mrf.mxu3  ;;  %v1068_v29 = vpop.f32.mrf.mxu1  ;;  %v1170_v54 = vadd.f32 %v1160_v27, %v1076_v50 }
 0x1e1   : > { %v1077_v2 = vadd.f32 %v1068_v29, %v983_v62 }
 0x1e2   : > { %v1264_v63 = vadd.f32 %v1254_v28, %v1170_v54 }
 0x1e7   : > { %v1162_v32 = vpop.f32.mrf.mxu2 }
 0x1e8   : > { %v3269_v34 = vpop.f32.mrf.mxu3  ;;  %v3274_v36 = vpop.f32.mrf.mxu1  ;;  %v1171_v6 = vadd.f32 %v1162_v32, %v1077_v2 }
 0x1e9   : > { %v1078_v21 = vadd.f32 %v3274_v36, %v984_v15  ;;  %v2823_v36 = vld [vmem:[%s3425_s5 + $0x80] sm:$0xff] }
 0x1ea   : > { %v1265_v16 = vadd.f32 %v3269_v34, %v1171_v6  ;;  %v2832_v34 = vld [vmem:[%s3425_s5 + $0xc8] sm:$0xff]  ;;  %1894 = vmatpush.bf16.msra.mxu3 %v2823_v36 }
 0x1eb   : > { %1906 = vmatpush.bf16.msra.mxu1 %v2832_v34 }
 0x1ef   : > { %v3282_v39 = vpop.f32.mrf.mxu2  ;;  %1907 = vmatpush.bf16.msra.mxu1 %v2831_v40  ;;  %v2868_v40 = vld [vmem:[%s3428_s8] ss:$0 sm:$0xff] }
 0x1f0   : > { %v3287_v42 = vpop.f32.mrf.mxu3  ;;  %v3292_v44 = vpop.f32.mrf.mxu1  ;;  %v1172_v28 = vadd.f32 %v3282_v39, %v1078_v21  ;;  %v2843_v21 = vld [vmem:[%s3427_s7 + $0x20] sm:$0xff] }
 0x1f1   : > { %v1079_v37 = vadd.f32 %v3292_v44, %v985_v35 }
 0x1f2   : > { %v1266_v20 = vadd.f32 %v3287_v42, %v1172_v28 }
 0x1f7   : > { %v3309_v52 = vpop.f32.mrf.mxu2 }
 0x1f8   : > { %v3311_v55 = vpop.f32.mrf.mxu3  ;;  %v1348_v60 = vpop.f32.mrf.mxu1  ;;  %v1173_v23 = vadd.f32 %v3309_v52, %v1079_v37 }
 0x1f9   : > { %v1358_v57 = vadd.f32 %v1348_v60, %v1264_v63 }
 0x1fa   : > { %v1267_v47 = vadd.f32 %v3311_v55, %v1173_v23 }
 0x1ff   : > { %v1442_v4 = vpop.f32.mrf.mxu2 }
 0x200   : > { %v1452_v7 = vadd.f32 %v1442_v4, %v1358_v57  ;;  %v1536_v8 = vpop.f32.mrf.mxu3  ;;  %v1350_v12 = vpop.f32.mrf.mxu1 }
 0x201   : > { %v1359_v25 = vadd.f32 %v1350_v12, %v1265_v16  ;;  %v2846_v16 = vld [vmem:[%s3427_s7 + $0x38] sm:$0xff] }
 0x202   : > { %v1546_v13 = vadd.f32 %v1536_v8, %v1452_v7  ;;  %1983 = vmatpush.bf16.msra.mxu2 %v2846_v16 }
 0x204   : > { %v1554_v17 = vadd.f32 %v3334_v56, %v1546_v13 }
 0x206   : > { %v1558_v24 = vmax.f32 %v1554_v17, 0.0  ;;  %v2845_v17 = vld [vmem:[%s3427_s7 + $0x30] sm:$0xff] }
 0x207   : > { %v1444_v27 = vpop.f32.mrf.mxu2  ;;  %1984 = vmatpush.bf16.msra.mxu2 %v2845_v17 }
 0x208   : > { %1562 = vst [vmem:[#allocation3] sm:$0xff] %v1558_v24  ;;  %v1453_v29 = vadd.f32 %v1444_v27, %v1359_v25  ;;  %v1538_v30 = vpop.f32.mrf.mxu3  ;;  %v1353_v32 = vpop.f32.mrf.mxu1  ;;  %v2842_v24 = vld [vmem:[%s3427_s7 + $0x18] sm:$0xff]  ;;  %v2841_v25 = vld [vmem:[%s3427_s7 + $0x10] sm:$0xff]  ;;  %v2839_v27 = vld [vmem:[%s3427_s7] sm:$0xff] }
 0x209   : > { %v1360_v39 = vadd.f32 %v1353_v32, %v1266_v20 }
 0x20a   : > { %v1547_v33 = vadd.f32 %v1538_v30, %v1453_v29  ;;  %v2867_v30 = vld [vmem:[%s3426_s6] ss:$0 sm:$0xff] }
 0x20b   : > { %1985 = vmatpush.bf16.msra.mxu2 %v2844_v18 }
 0x20c   : > { %v1555_v22 = vadd.f32 %v3334_v56, %v1547_v33 }
 0x20e   : > { %v1559_v38 = vmax.f32 %v1555_v22, 0.0 }
 0x20f   : > { %v1447_v41 = vpop.f32.mrf.mxu2  ;;  %v1566_v48 = vld [vmem:[#allocation3] ss:$2 sm:$0x3]  ;;  %v1568_v49 = vld [vmem:[#allocation3 + $0x1] ss:$2 sm:$0x3]  ;;  %1986 = vmatpush.bf16.msra.mxu2 %v2843_v21 }
 0x210   : > { %1563 = vst [vmem:[#allocation3 + $0x8] sm:$0xff] %v1559_v38  ;;  %v1454_v42 = vadd.f32 %v1447_v41, %v1360_v39  ;;  %v1541_v43 = vpop.f32.mrf.mxu3  ;;  %v1355_v46 = vpop.f32.mrf.mxu1  ;;  %v1573_v59 = vmax.f32 %v1566_v48, %v1568_v49 }
 0x211   : > { %v1361_v51 = vadd.f32 %v1355_v46, %v1267_v47 }
 0x212   : > { %v1548_v45 = vadd.f32 %v1541_v43, %v1454_v42 }
 0x213   : > { %1987 = vmatpush.bf16.msra.mxu2 %v2842_v24 }
 0x214   : > { %v1556_v44 = vadd.f32 %v3334_v56, %v1548_v45 }
 0x216   : > { %v1560_v50 = vmax.f32 %v1556_v44, 0.0 }
 0x217   : > { %v1449_v53 = vpop.f32.mrf.mxu2  ;;  %v1570_v54 = vld [vmem:[#allocation3 + $0x7] ss:$2 sm:$0x3]  ;;  %v1572_v58 = vld [vmem:[#allocation3 + $0x8] ss:$2 sm:$0x3]  ;;  %1988 = vmatpush.bf16.msra.mxu2 %v2841_v25 }
 0x218   : > { %1564 = vst [vmem:[#allocation3 + $0x10] sm:$0xff] %v1560_v50  ;;  %v1455_v52 = vadd.f32 %v1449_v53, %v1361_v51  ;;  %v1574_v60 = vmax.f32 %v1570_v54, %v1572_v58  ;;  %v1543_v61 = vpop.f32.mrf.mxu3 }
 0x21a   : > { %v1549_v62 = vadd.f32 %v1543_v61, %v1455_v52  ;;  %v1575_v63 = vmax.f32 %v1573_v59, %v1574_v60 }
 0x21b   : > { %1989 = vmatpush.bf16.msra.mxu2 %v2840_v26 }
 0x21c   : > { %v1557_v0 = vadd.f32 %v3334_v56, %v1549_v62  ;;  %v1593_v1 = vperm.slane %v1575_v63, 0  ;;  %v1588_v55 = vrot.slane %v1575_v63, 1 }
 0x21e   : > { %v1561_v2 = vmax.f32 %v1557_v0, 0.0  ;;  %v1597_v57 = vpack.c.bf16 %v1593_v1, %v1593_v1  ;;  %v1594_v3 = vperm.slane %v1588_v55, 0 }
 0x21f   : > { %v1577_v5 = vld [vmem:[#allocation3 + $0xe] ss:$2 sm:$0x3]  ;;  %v1579_v6 = vld [vmem:[#allocation3 + $0xf] ss:$2 sm:$0x3]  ;;  %1990 = vmatpush.bf16.msra.mxu2 %v2839_v27 }
 0x220   : > { %1565 = vst [vmem:[#allocation3 + $0x18] sm:$0xff] %v1561_v2  ;;  %1869 = vmatmul.bf16.vlgmr.msrb.gmra.mxu1 %v1597_v57  ;;  %v1598_v4 = vpack.c.bf16 %v1594_v3, %v1594_v3  ;;  %v1581_v7 = vld [vmem:[#allocation3 + $0x15] ss:$2 sm:$0x3]  ;;  %v1584_v9 = vmax.f32 %v1577_v5, %v1579_v6 }
 0x222   : > { %1882 = vmatmul.bf16.vlgmr.msrb.gmra.mxu2 %v1598_v4 }
 0x227   : > { %v1583_v8 = vld [vmem:[#allocation3 + $0x16] ss:$2 sm:$0x3] }
 0x228   : > { %v1585_v10 = vmax.f32 %v1581_v7, %v1583_v8 }
 0x22a   : > { %v1586_v11 = vmax.f32 %v1584_v9, %v1585_v10 }
 0x22c   : > { %v1595_v12 = vperm.slane %v1586_v11, 0  ;;  %v1591_v13 = vrot.slane %v1586_v11, 1 }
 0x22e   : > { %v1599_v14 = vpack.c.bf16 %v1595_v12, %v1595_v12  ;;  %v1596_v56 = vperm.slane %v1591_v13, 0 }
 0x230   : > { %1895 = vmatmul.bf16.vlgmr.msra.gmra.mxu3 %v1599_v14  ;;  %v1600_v15 = vpack.c.bf16 %v1596_v56, %v1596_v56 }
 0x232   : > { %1908 = vmatmul.bf16.vlgmr.msra.gmra.mxu1 %v1600_v15 }
 0x29d   : > { %v1870_v19 = vpop.f32.mrf.mxu1 }
 0x29e   : > { %v1871_v33 = vadd.f32 %v2867_v30, %v1870_v19 }
 0x2a5   : > { %v1872_v28 = vpop.f32.mrf.mxu1  ;;  %v1883_v29 = vpop.f32.mrf.mxu2 }
 0x2a6   : > { %v1884_v34 = vadd.f32 %v1883_v29, %v1871_v33 }
 0x2ad   : > { %v1885_v31 = vpop.f32.mrf.mxu2 }
 0x2af   : > { %v1909_v32 = vpop.f32.mrf.mxu1 }
 0x2b3   : > { %v1896_v35 = vpop.f32.mrf.mxu3 }
 0x2b4   : > { %v1897_v20 = vadd.f32 %v1896_v35, %v1884_v34 }
 0x2b6   : > { %v1910_v22 = vadd.f32 %v1909_v32, %v1897_v20 }
 0x2b7   : > { %v1911_v36 = vpop.f32.mrf.mxu1 }
 0x2b8   : > { %v1913_v37 = vmax.f32 %v1910_v22, 0.0 }
 0x2ba   : > { %v1914_v38 = vpack.c.bf16 %v1913_v37, %v1913_v37 }
 0x2bb   : > { %v1898_v39 = vpop.f32.mrf.mxu3 }
 0x2bc   : > { %1991 = vmatmul.bf16.vlgmr.msra.gmra.mxu2 %v1914_v38 }
 0x33f   : > { %v1992_v41 = vpop.f32.mrf.mxu2 }
 0x340   : > { %v1993_v23 = vadd.f32 %v2868_v40, %v1992_v41 }
 0x342   : > { %1996 = vst [vmem:[%s330_s19] sm:$0xff] %v1993_v23 }
 0x347   : > { %v1994_v42 = vpop.f32.mrf.mxu2 }
 0x348 PF: > { %s19_s30 = sadd.s32 1, %s2875_s30  }
 0x349   : > { %p16_p4 = scmp.ge.s32.totalorder %s19_s30, 4  }
 0x34b   :  { %18 = sbr.rel (!%p16_p4) target bundleno = 1 (0x1), region = 128 }

</bundles_post_ra>
